<compile_context>
chip_gen: v6e
topology: v6e:2x2x1
jax: 0.10.0
libtpu: 0.0.40
codegen_flags: <defaults>
</compile_context>

<pallas_src>
import functools

import jax
import jax.numpy as jnp
from jax.experimental import pallas as pl
from jax.experimental.pallas import tpu as pltpu


def _round_up(x, m):
    return (x + m - 1) // m * m


# ----------------------------------------------------------------------------
# Fused ResConv Pallas kernel (one batch element per grid step)
# ----------------------------------------------------------------------------
def _resconv_kernel(xp_ref, w_ref, bb_ref, o_ref, *, H, W, d):
    """
    xp_ref : (1, H+2d, W+2d, C) f32   spatially haloed + channel-padded NHWC
    w_ref  : (9*C, C)           bf16  beta-folded weights, K = (tap, Cin)
    bb_ref : (1, C)             f32   beta-folded bias
    o_ref  : (1, H, W, C)       f32
    """
    C = w_ref.shape[-1]
    xw = xp_ref[0]                               # (H+2d, W+2d, C) f32 in VMEM
    xw_bf = xw.astype(jnp.bfloat16)              # single cast for all 9 taps

    # Build the (H*W, 9*C) im2col buffer in VMEM: tap-major along K, matching
    # the prepared weight layout.  One big MXU matmul, f32 accumulation.
    cols = []
    for k in range(9):
        ky, kx = k // 3, k % 3
        patch = xw_bf[ky * d:ky * d + H, kx * d:kx * d + W, :]
        cols.append(patch.reshape(H * W, C))
    a = jnp.concatenate(cols, axis=-1)                        # (H*W, 9C) bf16
    acc = jnp.dot(a, w_ref[...], preferred_element_type=jnp.float32)

    center = xw[d:d + H, d:d + W, :].reshape(H * W, C)        # residual (f32)
    y = acc + bb_ref[...] + center                            # beta pre-folded
    y = jnp.where(y >= 0.0, y, 0.2 * y)                       # LeakyReLU(0.2)
    o_ref[0] = y.reshape(H, W, C)


def resconv_forward(prep, x_nchw, *, dilation=1):
    """PyTorch-semantics forward: NCHW float32 in, NCHW float32 out."""
    w, bias_beta = prep["w"], prep["bias_beta"]
    n, c, h, wd = x_nchw.shape
    cp = w.shape[-1]
    d = dilation

    x = jnp.transpose(x_nchw, (0, 2, 3, 1))                # NHWC (boundary)
    # Single pad pass: conv halo + channel pad to the lane-dense width.
    xp = jnp.pad(x, ((0, 0), (d, d), (d, d), (0, cp - c)))
    hp, wp = h + 2 * d, wd + 2 * d

    kernel = functools.partial(_resconv_kernel, H=h, W=wd, d=d)
    out = pl.pallas_call(
        kernel,
        out_shape=jax.ShapeDtypeStruct((n, h, wd, cp), jnp.float32),
        grid=(n,),
        in_specs=[
            pl.BlockSpec((1, hp, wp, cp), lambda i: (i, 0, 0, 0)),
            pl.BlockSpec((9 * cp, cp), lambda i: (0, 0)),
            pl.BlockSpec((1, cp), lambda i: (0, 0)),
        ],
        out_specs=pl.BlockSpec((1, h, wd, cp), lambda i: (i, 0, 0, 0)),
        compiler_params=pltpu.CompilerParams(
            dimension_semantics=("parallel",)),
    )(xp, w, bias_beta)

    if cp != c:
        out = out[..., :c]
    return jnp.transpose(out, (0, 3, 1, 2))                # back to NCHW


# ----------------------------------------------------------------------------
# Parameters (PyTorch layout) and run-once layout preparation
# ----------------------------------------------------------------------------
def init_resconv_params(key, c):
    kw, kb = jax.random.split(key)
    return {
        "W": jax.random.normal(kw, (c, c, 3, 3), jnp.float32) * 0.05,  # OIHW
        "b": jax.random.normal(kb, (c,), jnp.float32) * 0.05,
        "beta": jnp.ones((1, c, 1, 1), jnp.float32),   # nn.Parameter(ones)
    }


def prepare_params(p):
    """Run-once transforms: fold beta, OIHW f32 -> (9*Cin_p, Cout_p) bf16."""
    W, b, beta = p["W"], p["b"], p["beta"]
    cout, cin, kh, kw = W.shape
    beta_vec = beta.reshape(cout)
    Wf = W * beta_vec[:, None, None, None]                 # fold beta in f32
    bf = b * beta_vec
    cp = _round_up(cout, 128)                              # lane-dense channels
    wm = jnp.transpose(Wf, (2, 3, 1, 0)).reshape(kh * kw, cin, cout)
    w_p = jnp.zeros((kh * kw, cp, cp), jnp.float32)
    w_p = w_p.at[:, :cin, :cout].set(wm)
    w_p = w_p.reshape(kh * kw * cp, cp).astype(jnp.bfloat16)
    bias_p = jnp.zeros((1, cp), jnp.float32).at[0, :cout].set(bf)
    return {"w": w_p, "bias_beta": bias_p}


# ----------------------------------------------------------------------------
# Pure-JAX reference (same bf16-input / f32-accumulate precision choice)
# ----------------------------------------------------------------------------
def resconv_reference(p, x, *, dilation=1):
    y = jax.lax.conv_general_dilated(
        x.astype(jnp.bfloat16), p["W"].astype(jnp.bfloat16),
        window_strides=(1, 1),
        padding=((dilation, dilation), (dilation, dilation)),
        rhs_dilation=(dilation, dilation),
        dimension_numbers=("NCHW", "OIHW", "NCHW"),
        preferred_element_type=jnp.float32)
    y = (y + p["b"][None, :, None, None]) * p["beta"] + x
    return jnp.where(y >= 0.0, y, 0.2 * y)


# ----------------------------------------------------------------------------
if __name__ == "__main__":
    root = jax.random.PRNGKey(0)

    # (channels, H, W, dilation): 128-channel d=1 case (lane-exact) and a
    # 64-channel d=2 case exercising the channel-pad + dilation paths.
    cases = [(128, 16, 16, 1), (64, 16, 16, 2)]
    for idx, (c, h, w, dil) in enumerate(cases):
        kp, kx = jax.random.split(jax.random.fold_in(root, idx))
        params = init_resconv_params(kp, c)
        prep = prepare_params(params)          # run-once weight layout prep
        x = jax.random.uniform(kx, (2, c, h, w), jnp.float32)

        fwd = jax.jit(functools.partial(resconv_forward, dilation=dil))
        out = fwd(prep, x)
        jax.block_until_ready(out)
        assert out.shape == x.shape and out.dtype == jnp.float32

        ref = resconv_reference(params, x, dilation=dil)
        max_err = float(jnp.max(jnp.abs(out - ref)))
        assert jnp.allclose(out, ref, atol=5e-3, rtol=5e-3), max_err

    print("KERNEL_OK")
</pallas_src>

<mosaic_0001>
module attributes {stable_mosaic.version = 11 : i64} {
  func.func @_resconv_kernel(%arg0: i32, %arg1: memref<1x18x18x128xf32, #tpu.memory_space<vmem>>, %arg2: memref<1152x128xbf16, #tpu.memory_space<vmem>>, %arg3: memref<1x128xf32, #tpu.memory_space<vmem>>, %arg4: memref<1x16x16x128xf32, #tpu.memory_space<vmem>>) attributes {dimension_semantics = [#tpu.dimension_semantics<parallel>], iteration_bounds = array<i64: 2>, scalar_prefetch = 0 : i64, scratch_operands = 0 : i64, tpu.core_type = #tpu.core_type<tc>, window_params = [{transform_indices = @transform_0, window_bounds = array<i64: 1, 18, 18, 128>}, {pipeline_mode = #tpu.pipeline_mode<synchronous>, transform_indices = @transform_1, window_bounds = array<i64: 1152, 128>}, {pipeline_mode = #tpu.pipeline_mode<synchronous>, transform_indices = @transform_2, window_bounds = array<i64: 1, 128>}, {transform_indices = @transform_3, window_bounds = array<i64: 1, 16, 16, 128>}]} {
    %c0 = arith.constant 0 : index
    %c0_0 = arith.constant 0 : index
    %c0_1 = arith.constant 0 : index
    %c0_2 = arith.constant 0 : index
    %0 = vector.load %arg1[%c0, %c0_0, %c0_1, %c0_2] : memref<1x18x18x128xf32, #tpu.memory_space<vmem>>, vector<1x18x18x128xf32>
    %1 = vector.shape_cast %0 : vector<1x18x18x128xf32> to vector<18x18x128xf32>
    %2 = arith.truncf %1 : vector<18x18x128xf32> to vector<18x18x128xbf16>
    %3 = vector.extract_strided_slice %2 {offsets = [0, 0, 0], sizes = [16, 16, 128], strides = [1, 1, 1]} : vector<18x18x128xbf16> to vector<16x16x128xbf16>
    %4 = vector.shape_cast %3 : vector<16x16x128xbf16> to vector<256x128xbf16>
    %5 = vector.extract_strided_slice %2 {offsets = [0, 1, 0], sizes = [16, 16, 128], strides = [1, 1, 1]} : vector<18x18x128xbf16> to vector<16x16x128xbf16>
    %6 = vector.shape_cast %5 : vector<16x16x128xbf16> to vector<256x128xbf16>
    %7 = vector.extract_strided_slice %2 {offsets = [0, 2, 0], sizes = [16, 16, 128], strides = [1, 1, 1]} : vector<18x18x128xbf16> to vector<16x16x128xbf16>
    %8 = vector.shape_cast %7 : vector<16x16x128xbf16> to vector<256x128xbf16>
    %9 = vector.extract_strided_slice %2 {offsets = [1, 0, 0], sizes = [16, 16, 128], strides = [1, 1, 1]} : vector<18x18x128xbf16> to vector<16x16x128xbf16>
    %10 = vector.shape_cast %9 : vector<16x16x128xbf16> to vector<256x128xbf16>
    %11 = vector.extract_strided_slice %2 {offsets = [1, 1, 0], sizes = [16, 16, 128], strides = [1, 1, 1]} : vector<18x18x128xbf16> to vector<16x16x128xbf16>
    %12 = vector.shape_cast %11 : vector<16x16x128xbf16> to vector<256x128xbf16>
    %13 = vector.extract_strided_slice %2 {offsets = [1, 2, 0], sizes = [16, 16, 128], strides = [1, 1, 1]} : vector<18x18x128xbf16> to vector<16x16x128xbf16>
    %14 = vector.shape_cast %13 : vector<16x16x128xbf16> to vector<256x128xbf16>
    %15 = vector.extract_strided_slice %2 {offsets = [2, 0, 0], sizes = [16, 16, 128], strides = [1, 1, 1]} : vector<18x18x128xbf16> to vector<16x16x128xbf16>
    %16 = vector.shape_cast %15 : vector<16x16x128xbf16> to vector<256x128xbf16>
    %17 = vector.extract_strided_slice %2 {offsets = [2, 1, 0], sizes = [16, 16, 128], strides = [1, 1, 1]} : vector<18x18x128xbf16> to vector<16x16x128xbf16>
    %18 = vector.shape_cast %17 : vector<16x16x128xbf16> to vector<256x128xbf16>
    %19 = vector.extract_strided_slice %2 {offsets = [2, 2, 0], sizes = [16, 16, 128], strides = [1, 1, 1]} : vector<18x18x128xbf16> to vector<16x16x128xbf16>
    %20 = vector.shape_cast %19 : vector<16x16x128xbf16> to vector<256x128xbf16>
    %21 = tpu.concatenate %4, %6, %8, %10, %12, %14, %16, %18, %20 in 1 : vector<256x128xbf16>, vector<256x128xbf16>, vector<256x128xbf16>, vector<256x128xbf16>, vector<256x128xbf16>, vector<256x128xbf16>, vector<256x128xbf16>, vector<256x128xbf16>, vector<256x128xbf16> -> vector<256x1152xbf16>
    %c0_3 = arith.constant 0 : index
    %c0_4 = arith.constant 0 : index
    %22 = vector.load %arg2[%c0_3, %c0_4] : memref<1152x128xbf16, #tpu.memory_space<vmem>>, vector<1152x128xbf16>
    %cst = arith.constant dense<0.000000e+00> : vector<256x128xf32>
    %23 = tpu.matmul %21, %22, %cst {dimension_numbers = #tpu.dot_dimension_numbers<[1], [0], [0], [1], [0, 0, 1, 1], [], []>} : vector<256x1152xbf16>, vector<1152x128xbf16>, vector<256x128xf32> -> vector<256x128xf32>
    %24 = vector.extract_strided_slice %1 {offsets = [1, 1, 0], sizes = [16, 16, 128], strides = [1, 1, 1]} : vector<18x18x128xf32> to vector<16x16x128xf32>
    %25 = vector.shape_cast %24 : vector<16x16x128xf32> to vector<256x128xf32>
    %c0_5 = arith.constant 0 : index
    %c0_6 = arith.constant 0 : index
    %26 = vector.load %arg3[%c0_5, %c0_6] : memref<1x128xf32, #tpu.memory_space<vmem>>, vector<1x128xf32>
    %27 = vector.broadcast %26 : vector<1x128xf32> to vector<256x128xf32>
    %28 = arith.addf %23, %27 : vector<256x128xf32>
    %29 = arith.addf %28, %25 : vector<256x128xf32>
    %cst_7 = arith.constant 0.000000e+00 : f32
    %30 = vector.broadcast %cst_7 : f32 to vector<256x128xf32>
    %31 = arith.cmpf oge, %29, %30 : vector<256x128xf32>
    %cst_8 = arith.constant 2.000000e-01 : f32
    %32 = vector.broadcast %cst_8 : f32 to vector<256x128xf32>
    %33 = arith.mulf %32, %29 : vector<256x128xf32>
    %34 = arith.select %31, %29, %33 : vector<256x128xi1>, vector<256x128xf32>
    %35 = vector.shape_cast %34 : vector<256x128xf32> to vector<16x16x128xf32>
    %c0_9 = arith.constant 0 : index
    %c0_10 = arith.constant 0 : index
    %c0_11 = arith.constant 0 : index
    %c0_12 = arith.constant 0 : index
    %36 = vector.load %arg4[%c0_9, %c0_10, %c0_11, %c0_12] : memref<1x16x16x128xf32, #tpu.memory_space<vmem>>, vector<1x16x16x128xf32>
    %37 = vector.shape_cast %36 : vector<1x16x16x128xf32> to vector<16x16x128xf32>
    %38 = vector.shape_cast %35 : vector<16x16x128xf32> to vector<1x16x16x128xf32>
    tpu.vector_store %arg4[%c0_9, %c0_10, %c0_11, %c0_12], %38 {strides = array<i32>} : memref<1x16x16x128xf32, #tpu.memory_space<vmem>>, vector<1x16x16x128xf32>,
    return
  }
  func.func @transform_0(%arg0: i32) -> (i32, i32, i32, i32) {
    %c0_i32 = arith.constant 0 : i32
    %c0_i32_0 = arith.constant 0 : i32
    %c0_i32_1 = arith.constant 0 : i32
    %c0_i32_2 = arith.constant 0 : i32
    return %arg0, %c0_i32, %c0_i32_0, %c0_i32_1 : i32, i32, i32, i32
  }
  func.func @transform_1(%arg0: i32) -> (i32, i32) {
    %c0_i32 = arith.constant 0 : i32
    %c0_i32_0 = arith.constant 0 : i32
    %c0_i32_1 = arith.constant 0 : i32
    return %c0_i32, %c0_i32_0 : i32, i32
  }
  func.func @transform_2(%arg0: i32) -> (i32, i32) {
    %c0_i32 = arith.constant 0 : i32
    %c0_i32_0 = arith.constant 0 : i32
    %c0_i32_1 = arith.constant 0 : i32
    return %c0_i32, %c0_i32_0 : i32, i32
  }
  func.func @transform_3(%arg0: i32) -> (i32, i32, i32, i32) {
    %c0_i32 = arith.constant 0 : i32
    %c0_i32_0 = arith.constant 0 : i32
    %c0_i32_1 = arith.constant 0 : i32
    %c0_i32_2 = arith.constant 0 : i32
    return %arg0, %c0_i32, %c0_i32_0, %c0_i32_1 : i32, i32, i32, i32
  }
}

</mosaic_0001>

<bundles_post_ra>
// kernel: resconv_forward.1
= control target key start
LH: loop header
LB: loop body
LE: loop exit
PB: predicated region body
PF: predicated region fallthrough
CT: control target
= control target key end

     0   :  { %8 = vsyncpa [#allocation3], 0  ;;  %s4717_s0 = inlined_call_operand.vmem [shape: f32[2,18,18,128], index: 0, kind: input, shape index: {}]   ;;  %s4718_s1 = inlined_call_operand.vmem [shape: bf16[1152,128], index: 1, kind: input, shape index: {}]   ;;  %s4719_s2 = inlined_call_operand.vmem [shape: f32[1,128], index: 2, kind: input, shape index: {}]   ;;  %s4720_s3 = inlined_call_operand.hbm [shape: f32[2,16,16,128], index: 3, kind: output, shape index: {}]  }
   0x1   :  { %10 = vsyncpa [#allocation3 + $0x1], 0  ;;  %s3257_s12 = smov 0   ;;  %s3259_s13 = smov 0  }
   0x2   :  { %s3261_s14 = smov 0   ;;  %s3263_s15 = smov 0  }
   0x3 LB: > { %s3278_s16 = sadd.s32 4294967295, %s3232_s15   ;;  %s2389_s17 = sadd.s32 4294967294, %s3232_s15   ;;  %s3232_s15 = sphi %s3263_s15, %s4788_s15   ;;  %s3228_s14 = sphi %s3261_s14, %s4787_s14   ;;  %s3224_s13 = sphi %s3259_s13, %s4786_s13   ;;  %s3220_s12 = sphi %s3257_s12, %s4785_s12  }
   0x4   : > { %s3282_s18 = sadd.s32 1, %s3232_s15   ;;  %s91_s19 = sadd.s32 1, %s3228_s14 }
   0x5   : > { %s88_s20 = ssub.s32 %s3232_s15, %s3282_s18  ;;  %p101_p0 = scmp.ne.s32.totalorder %s3228_s14, %s3224_s13 }
   0x6   : > { %p89_p1 = scmp.eq.s32.totalorder %s88_s20, 0  ;;  %p102_p2 = scmp.eq.s32.totalorder %s3278_s16, 1 }
   0x7   : > { %p107_p3 = scmp.ne.s32.totalorder %s3224_s13, %s3220_s12  ;;  %p108_p4 = scmp.eq.s32.totalorder %s2389_s17, 1 }
   0x8   : > { %s3293_s21 = scalar_select %p89_p1, %s3228_s14, %s91_s19  }
   0x9   : > { %p3295_p5 = por %p102_p2, %p101_p0  ;;  %p3299_p6 = por %p108_p4, %p107_p3 }
   0xa   : > { %p2392_p7 = scmp.ge.s32.totalorder %s3232_s15, 1  ;;  %p140_p8 = scmp.lt.s32.totalorder %s3232_s15, 3 }
   0xc   : > { %p141_p9 = pnand %p2392_p7, %p140_p8 }
   0xe   : > { %144 = sbr.rel (%p141_p9) target bundleno = 556 (0x22c), region = 32 }
  0x13   : > { %v3052_v0 = vld [vmem:[%s4718_s1 + $0x78] sm:$0xff]   ;;  %p164_p10 = scmp.lt.s32.totalorder %s3278_s16, 1  ;;  %v3054_v2 = vld [vmem:[%s4718_s1 + $0x70] sm:$0xff]   ;;  %v3056_v4 = vld [vmem:[%s4718_s1 + $0x68] sm:$0xff]   ;;  %vm260_vm0 = vsmask.f32 7424 }
  0x14   : > { %v3053_v1 = vld [vmem:[%s4718_s1 + $0x38] sm:$0xff]   ;;  %2474 = vmatprep.subr.bf16.mxu0 %v3052_v0  ;;  %2994 = vmatprep.subr.bf16.mxu1 %v3052_v0  ;;  %v3055_v3 = vld [vmem:[%s4718_s1 + $0x30] sm:$0xff]   ;;  %v3057_v5 = vld [vmem:[%s4718_s1 + $0x28] sm:$0xff]   ;;  %vm501_vm1 = vcmask 1046528   ;;  %s161_s11 = sand.u32 1, %s3224_s13   ;;  %s3234_s29 = smov [#allocation2]  }
  0x15   : > { %2475 = vmatpush3.bf16.msra.mxu0 %v3053_v1  ;;  %3002 = vmatpush3.bf16.msra.mxu1 %v3053_v1  ;;  %s165_s7 = scalar_select %p164_p10, %s3278_s16, 1  ;;  %v3058_v6 = vld [vmem:[%s4718_s1 + $0x60] sm:$0xff]   ;;  %v3060_v8 = vld [vmem:[%s4718_s1 + $0x58] sm:$0xff]   ;;  %v3062_v10 = vld [vmem:[%s4718_s1 + $0x50] sm:$0xff]  }
  0x16   : > { %2476 = vmatprep.subr.bf16.mxu0 %v3054_v2  ;;  %2995 = vmatprep.subr.bf16.mxu1 %v3054_v2  ;;  %v3059_v7 = vld [vmem:[%s4718_s1 + $0x20] sm:$0xff]   ;;  %v3061_v9 = vld [vmem:[%s4718_s1 + $0x18] sm:$0xff]   ;;  %v3063_v21 = vld [vmem:[%s4718_s1 + $0x10] sm:$0xff]   ;;  %s3176_s30 = sshll.u32 %s3234_s29, 4  ;;  %s3177_s30 = int_to_ptr.vmem [resolvable:$false] %s3176_s30 }
  0x17   : > { %s3010_s17 = smul.u32 432, %s165_s7  ;;  %v3064_v25 = vld [vmem:[%s4718_s1 + $0x48] sm:$0xff]   ;;  %v3066_v35 = vld [vmem:[%s4718_s1 + $0x40] sm:$0xff]   ;;  %v3068_v49 = vld [vmem:[%s4718_s1 + $0xf8] sm:$0xff]   ;;  %s3178_s4 = scalar_lea.vmem %s3177_s30, 8192 }
  0x18   : > { %v3065_v29 = vld [vmem:[%s4718_s1 + $0x8] sm:$0xff]   ;;  %v3067_v37 = vld [vmem:[%s4718_s1] sm:$0xff]   ;;  %v3071_v50 = vld [vmem:[%s4718_s1 + $0x178] sm:$0xff]  }
  0x19   : > { %2477 = vmatpush3.bf16.msra.mxu0 %v3055_v3  ;;  %3003 = vmatpush3.bf16.msra.mxu1 %v3055_v3  ;;  %s3337_s28 = scalar_lea.vmem %s4717_s0, %s3010_s17  ;;  %v3069_v54 = vld [vmem:[%s4718_s1 + $0xb8] sm:$0xff]   ;;  %v3070_v63 = vld [vmem:[%s4718_s1 + $0xf0] sm:$0xff]   ;;  %s4419_s17 = sshll.u32 %s161_s11, 8 }
  0x1a   : > { %2478 = vmatprep.subr.bf16.mxu0 %v3056_v4  ;;  %2996 = vmatprep.subr.bf16.mxu1 %v3056_v4  ;;  %v170_v11 = vld [vmem:[%s3337_s28] sm:$0xff]  ;;  %v171_v12 = vld [vmem:[%s3337_s28 + $0x8] sm:$0xff]  ;;  %v172_v13 = vld [vmem:[%s3337_s28 + $0x10] sm:$0x3]  ;;  %s4453_s19 = scalar_lea.vmem [#allocation2], %s4419_s17 }
  0x1b   : > { %v3348_v14 = vpack.c.bf16 %v171_v12, %v170_v11  ;;  %v3350_v15 = vpack.c.bf16 %v172_v13, %v172_v13  ;;  %v206_v16 = vld [vmem:[%s3337_s28 + $0x120] sm:$0xff]  ;;  %v207_v17 = vld [vmem:[%s3337_s28 + $0x128] sm:$0xff]  ;;  %v208_v18 = vld [vmem:[%s3337_s28 + $0x130] sm:$0x3]  ;;  %s2327_s20 = sshll.u32 %s4453_s19, 4  ;;  %s4672_s20 = int_to_ptr.vmem [resolvable:$true] %s2327_s20 }
  0x1c   : > { %v3355_v19 = vpack.c.bf16 %v207_v17, %v206_v16  ;;  %v3357_v20 = vpack.c.bf16 %v208_v18, %v208_v18  ;;  %v173_v39 = vld [vmem:[%s3337_s28 + $0x18] sm:$0xff]  ;;  %v174_v40 = vld [vmem:[%s3337_s28 + $0x20] sm:$0xff]  ;;  %v175_v42 = vld [vmem:[%s3337_s28 + $0x28] sm:$0x3]  ;;  %s3172_s27 = scalar_lea.vmem %s4672_s20, 4096  ;;  %p3179_p0 = scmp.lt.s32.totalorder %s4672_s20, %s3177_s30 }
  0x1d   : > { %2479 = vmatpush3.bf16.msra.mxu0 %v3057_v5  ;;  %3004 = vmatpush3.bf16.msra.mxu1 %v3057_v5  ;;  %v262_v22 = vshrl.u32 %v3348_v14, 16  ;;  %v264_v23 = vshll.u32 %v3348_v14, 16  ;;  %v269_v24 = vshll.u32 %v3350_v15, 16  ;;  %v3387_v43 = vpack.c.bf16 %v174_v40, %v173_v39  ;;  %v209_v44 = vld [vmem:[%s3337_s28 + $0x138] sm:$0xff]  ;;  %v210_v45 = vld [vmem:[%s3337_s28 + $0x140] sm:$0xff]  ;;  %v176_v2 = vld [vmem:[%s3337_s28 + $0x30] sm:$0xff]  ;;  %p3173_p11 = scmp.ne.s32.totalorder %s4672_s20, %s3172_s27  ;;  %p3180_p1 = scmp.lt.s32.totalorder %s3178_s4, %s3172_s27 }
  0x1e   : > { %2480 = vmatprep.subr.bf16.mxu0 %v3058_v6  ;;  %2997 = vmatprep.subr.bf16.mxu1 %v3058_v6  ;;  %v406_v26 = vshrl.u32 %v3355_v19, 16  ;;  %v408_v27 = vshll.u32 %v3355_v19, 16  ;;  %v413_v28 = vshll.u32 %v3357_v20, 16  ;;  %v3391_v46 = vpack.c.bf16 %v175_v42, %v175_v42  ;;  %v211_v47 = vld [vmem:[%s3337_s28 + $0x148] sm:$0x3]  ;;  %v3073_v55 = vld [vmem:[%s4718_s1 + $0x138] sm:$0xff]  }
  0x1f   : > { %v266_v30 = vrot.slane %v264_v23, 1  ;;  %v271_v31 = vrot.slane %v269_v24, 1  ;;  %v3394_v48 = vpack.c.bf16 %v210_v45, %v209_v44  ;;  %v274_v51 = vshrl.u32 %v3387_v43, 16  ;;  %v177_v3 = vld [vmem:[%s3337_s28 + $0x38] sm:$0xff]  ;;  %v178_v5 = vld [vmem:[%s3337_s28 + $0x40] sm:$0x3]  ;;  %p3174_p12 = pnand %p3173_p11, %p3295_p5  ;;  %p3181_p2 = por %p3180_p1, %p3179_p0 }
  0x20   : > { %v410_v32 = vrot.slane %v408_v27, 1  ;;  %v415_v33 = vrot.slane %v413_v28, 1  ;;  %v276_v52 = vshll.u32 %v3387_v43, 16  ;;  %v3404_v53 = vpack.c.bf16 %v211_v47, %v211_v47  ;;  %v214_v11 = vld [vmem:[%s3337_s28 + $0x160] sm:$0x3]  ;;  %v3072_v13 = vld [vmem:[%s4718_s1 + $0xb0] sm:$0xff]  }
  0x21   : > { %2481 = vmatpush3.bf16.msra.mxu0 %v3059_v7  ;;  %3005 = vmatpush3.bf16.msra.mxu1 %v3059_v7  ;;  %v267_v34 = vor.u32 %v266_v30, %v262_v22  ;;  %v281_v56 = vshll.u32 %v3391_v46, 16  ;;  %v418_v57 = vshrl.u32 %v3394_v48, 16  ;;  %v420_v58 = vshll.u32 %v3394_v48, 16  ;;  %v212_v7 = vld [vmem:[%s3337_s28 + $0x150] sm:$0xff]  ;;  %v3074_v23 = vld [vmem:[%s4718_s1 + $0xe8] sm:$0xff]   ;;  %p3175_p13 = pneg %p3174_p12 }
  0x22   : > { %2482 = vmatprep.subr.bf16.mxu0 %v3060_v8  ;;  %2998 = vmatprep.subr.bf16.mxu1 %v3060_v8  ;;  %v411_v36 = vor.u32 %v410_v32, %v406_v26  ;;  %v278_v59 = vrot.slane %v276_v52, 1  ;;  %v425_v60 = vshll.u32 %v3404_v53, 16  ;;  %v3423_v6 = vpack.c.bf16 %v177_v3, %v176_v2  ;;  %v213_v8 = vld [vmem:[%s3337_s28 + $0x158] sm:$0xff]  ;;  %v3079_v22 = vld [vmem:[%s4718_s1 + $0x170] sm:$0xff]   ;;  %v3075_v27 = vld [vmem:[%s4718_s1 + $0xa8] sm:$0xff]  }
  0x23   : > { %v272_v38 = vsel %vm260_vm0, %v267_v34, %v271_v31  ;;  %v283_v61 = vrot.slane %v281_v56, 1  ;;  %v422_v62 = vrot.slane %v420_v58, 1  ;;  %v3435_v12 = vpack.c.bf16 %v213_v8, %v212_v7  ;;  %v3081_v34 = vld [vmem:[%s4718_s1 + $0x130] sm:$0xff]   ;;  %v179_v39 = vld [vmem:[%s3337_s28 + $0x48] sm:$0xff]  ;;  %v181_v44 = vld [vmem:[%s3337_s28 + $0x58] sm:$0x3]  ;;  %p3182_p3 = pnand %p3181_p2, %p3175_p13 }
  0x24   : > { %1380 = vmatprep.mubr.bf16.mxu0 %v272_v38  ;;  %v3384_v41 = vsel %vm260_vm0, %v411_v36, %v415_v33  ;;  %v279_v0 = vor.u32 %v278_v59, %v274_v51  ;;  %v427_v1 = vrot.slane %v425_v60, 1  ;;  %v286_v17 = vshrl.u32 %v3423_v6, 16  ;;  %v180_v40 = vld [vmem:[%s3337_s28 + $0x50] sm:$0xff]  ;;  %v215_v47 = vld [vmem:[%s3337_s28 + $0x168] sm:$0xff]  ;;  %v217_v51 = vld [vmem:[%s3337_s28 + $0x178] sm:$0x3] }
  0x25   : > { %2483 = vmatpush3.bf16.msra.mxu0 %v3061_v9  ;;  %3006 = vmatpush3.bf16.msra.mxu1 %v3061_v9  ;;  %v423_v4 = vor.u32 %v422_v62, %v418_v57  ;;  %v288_v18 = vshll.u32 %v3423_v6, 16  ;;  %v432_v26 = vshll.u32 %v3435_v12, 16  ;;  %v3482_v45 = vpack.c.bf16 %v180_v40, %v179_v39  ;;  %v3080_v58 = vld [vmem:[%s4718_s1 + $0x98] sm:$0xff]   ;;  %v3082_v2 = vld [vmem:[%s4718_s1 + $0xd0] sm:$0xff]   ;;  %v3087_v8 = vld [vmem:[%s4718_s1 + $0x168] sm:$0xff]  }
  0x26   : > { %2484 = vmatprep.subr.bf16.mxu0 %v3062_v10  ;;  %2999 = vmatprep.subr.bf16.mxu1 %v3062_v10  ;;  %v3430_v9 = vsel %vm260_vm0, %v279_v0, %v283_v61  ;;  %v3432_v10 = vpack.c.bf16 %v178_v5, %v178_v5  ;;  %v3498_v57 = vpack.c.bf16 %v217_v51, %v217_v51  ;;  %v3083_v5 = vld [vmem:[%s4718_s1 + $0x90] sm:$0xff]   ;;  %v3093_v40 = vld [vmem:[%s4718_s1 + $0x120] sm:$0xff]  }
  0x27   : > { %1476 = vmatprep.mubr.bf16.mxu1 %v3384_v41  ;;  %v3441_v16 = vsel %vm260_vm0, %v423_v4, %v427_v1  ;;  %v290_v28 = vrot.slane %v288_v18, 1  ;;  %v434_v31 = vrot.slane %v432_v26, 1  ;;  %v300_v56 = vshll.u32 %v3482_v45, 16  ;;  %v183_v18 = vld [vmem:[%s3337_s28 + $0x68] sm:$0xff]  ;;  %v188_v51 = vld [vmem:[%s3337_s28 + $0x90] sm:$0xff] }
  0x28   : > { %v293_v24 = vshll.u32 %v3432_v10, 16 }
  0x29   : > { %2485 = vmatpush3.bf16.msra.mxu0 %v3063_v21  ;;  %3007 = vmatpush3.bf16.msra.mxu1 %v3063_v21  ;;  %v3445_v21 = vpack.c.bf16 %v214_v11, %v214_v11  ;;  %v291_v32 = vor.u32 %v290_v28, %v286_v17  ;;  %v302_v62 = vrot.slane %v300_v56, 1  ;;  %v182_v17 = vld [vmem:[%s3337_s28 + $0x60] sm:$0xff]  ;;  %v189_v56 = vld [vmem:[%s3337_s28 + $0x98] sm:$0xff] }
  0x2a   : > { %2486 = vmatprep.subr.bf16.mxu0 %v3064_v25  ;;  %3000 = vmatprep.subr.bf16.mxu1 %v3064_v25  ;;  %v430_v25 = vshrl.u32 %v3435_v12, 16  ;;  %v295_v30 = vrot.slane %v293_v24, 1  ;;  %v3531_v24 = vpack.c.bf16 %v183_v18, %v182_v17  ;;  %v3091_v17 = vld [vmem:[%s4718_s1 + $0x1b8] sm:$0xff]  }
  0x2c   : > { %v435_v36 = vor.u32 %v434_v31, %v430_v25  ;;  %v3472_v38 = vsel %vm260_vm0, %v291_v32, %v295_v30  ;;  %v3084_v25 = vld [vmem:[%s4718_s1 + $0xc8] sm:$0xff]   ;;  %v310_v28 = vshrl.u32 %v3531_v24, 16  ;;  %v185_v30 = vld [vmem:[%s3337_s28 + $0x78] sm:$0xff]  ;;  %v186_v31 = vld [vmem:[%s3337_s28 + $0x80] sm:$0xff] }
  0x2d   : > { %2487 = vmatpush3.bf16.msra.mxu0 %v3065_v29  ;;  %3008 = vmatpush3.bf16.msra.mxu1 %v3065_v29  ;;  %v437_v29 = vshll.u32 %v3445_v21, 16  ;;  %v3086_v32 = vld [vmem:[%s4718_s1 + $0xc0] sm:$0xff]  }
  0x2e   : > { %2488 = vmatprep.subr.bf16.mxu0 %v3066_v35  ;;  %3001 = vmatprep.subr.bf16.mxu1 %v3066_v35  ;;  %v3076_v35 = vld [vmem:[%s4718_s1 + $0xe0] sm:$0xff]  }
  0x2f   : > { %v439_v33 = vrot.slane %v437_v29, 1  ;;  %v312_v29 = vshll.u32 %v3531_v24, 16 }
  0x31   : > { %2489 = vmatpush3.bf16.msra.mxu0 %v3067_v37  ;;  %3009 = vmatpush3.bf16.msra.mxu1 %v3067_v37  ;;  %v3077_v37 = vld [vmem:[%s4718_s1 + $0xa0] sm:$0xff]   ;;  %v3479_v42 = vsel %vm260_vm0, %v435_v36, %v439_v33 }
  0x32   : > { %2586 = vmatprep.subr.bf16.mxu1 %v3068_v49  ;;  %2698 = vmatprep.subr.bf16.mxu0 %v3071_v50  ;;  %v216_v49 = vld [vmem:[%s3337_s28 + $0x170] sm:$0xff]  ;;  %v3487_v50 = vpack.c.bf16 %v181_v44, %v181_v44  ;;  %v3092_v36 = vld [vmem:[%s4718_s1 + $0x160] sm:$0xff]  }
  0x33   : > { %v3490_v52 = vpack.c.bf16 %v216_v49, %v215_v47 }
  0x34   : > { %1381 = vmatmul.mubr.bf16.vlgmr.msra.gmra.mxu0 %v3348_v14  ;;  %1477 = vmatmul.mubr.bf16.vlgmr.msra.gmra.mxu1 %v3355_v19  ;;  %v305_v59 = vshll.u32 %v3487_v50, 16 }
  0x35   : > { %2587 = vmatpush3.bf16.msra.mxu1 %v3069_v54  ;;  %2699 = vmatpush3.bf16.msra.mxu0 %v3073_v55  ;;  %v3078_v54 = vld [vmem:[%s4718_s1 + $0xd8] sm:$0xff]   ;;  %v298_v55 = vshrl.u32 %v3482_v45, 16  ;;  %v442_v60 = vshrl.u32 %v3490_v52, 16  ;;  %v444_v61 = vshll.u32 %v3490_v52, 16 }
  0x36   : > { %2588 = vmatprep.subr.bf16.mxu1 %v3070_v63  ;;  %1388 = vmatprep.mubr.bf16.mxu0 %v3430_v9  ;;  %v449_v63 = vshll.u32 %v3498_v57, 16  ;;  %v307_v0 = vrot.slane %v305_v59, 1  ;;  %v503_v59 = vrot.slane %v3350_v15, 1  ;;  %v502_v15 = vrot.slane %v3348_v14, 1  ;;  %v3097_v14 = vld [vmem:[%s4718_s1 + $0x118] sm:$0xff]  }
  0x37   : > { %1484 = vmatprep.mubr.bf16.mxu1 %v3441_v16  ;;  %2700 = vmatprep.subr.bf16.mxu0 %v3079_v22  ;;  %v446_v1 = vrot.slane %v444_v61, 1  ;;  %v303_v3 = vor.u32 %v302_v62, %v298_v55  ;;  %v3570_v61 = vpack.c.bf16 %v189_v56, %v188_v51  ;;  %v3088_v62 = vld [vmem:[%s4718_s1 + $0x80] sm:$0xff]   ;;  %v196_v51 = vld [vmem:[%s3337_s28 + $0xd0] sm:$0x3]  ;;  %v3102_v56 = vld [vmem:[%s4718_s1 + $0x148] sm:$0xff]  }
  0x38   : > { %v451_v4 = vrot.slane %v449_v63, 1 }
  0x39   : > { %2589 = vmatpush3.bf16.msra.mxu1 %v3072_v13  ;;  %2701 = vmatpush3.bf16.msra.mxu0 %v3081_v34  ;;  %v447_v7 = vor.u32 %v446_v1, %v442_v60  ;;  %v3519_v11 = vsel %vm260_vm0, %v303_v3, %v307_v0  ;;  %v3089_v13 = vld [vmem:[%s4718_s1 + $0x128] sm:$0xff]   ;;  %v3090_v1 = vld [vmem:[%s4718_s1 + $0x1f8] sm:$0xff]  }
  0x3a   : > { %2590 = vmatprep.subr.bf16.mxu1 %v3074_v23  ;;  %v184_v23 = vld [vmem:[%s3337_s28 + $0x70] sm:$0x3]  ;;  %2702 = vmatprep.subr.bf16.mxu0 %v3087_v8  ;;  %v187_v34 = vld [vmem:[%s3337_s28 + $0x88] sm:$0x3] }
  0x3b   : > { %v3528_v22 = vsel %vm260_vm0, %v447_v7, %v451_v4  ;;  %v3537_v26 = vpack.c.bf16 %v184_v23, %v184_v23  ;;  %v3556_v39 = vpack.c.bf16 %v187_v34, %v187_v34  ;;  %v336_v4 = vshll.u32 %v3570_v61, 16  ;;  %v191_v7 = vld [vmem:[%s3337_s28 + $0xa8] sm:$0xff]  ;;  %v192_v8 = vld [vmem:[%s3337_s28 + $0xb0] sm:$0xff] }
  0x3c   : > { %1389 = vmatmul.mubr.bf16.gmra.mxu0 %v3387_v43  ;;  %1485 = vmatmul.mubr.bf16.gmra.mxu1 %v3394_v48  ;;  %v3094_v23 = vld [vmem:[%s4718_s1 + $0x1f0] sm:$0xff]   ;;  %v506_v34 = vrot.slane %v3391_v46, 1  ;;  %v3099_v46 = vld [vmem:[%s4718_s1 + $0x1e8] sm:$0xff]  }
  0x3d   : > { %2591 = vmatpush3.bf16.msra.mxu1 %v3075_v27  ;;  %1396 = vmatprep.mubr.bf16.mxu0 %v3472_v38  ;;  %v3085_v27 = vld [vmem:[%s4718_s1 + $0x88] sm:$0xff]   ;;  %v317_v33 = vshll.u32 %v3537_v26, 16  ;;  %v329_v55 = vshll.u32 %v3556_v39, 16 }
  0x3e   : > { %2592 = vmatprep.subr.bf16.mxu1 %v3076_v35  ;;  %1492 = vmatprep.mubr.bf16.mxu1 %v3479_v42  ;;  %v3551_v35 = vpack.c.bf16 %v186_v31, %v185_v30  ;;  %v3095_v30 = vld [vmem:[%s4718_s1 + $0x1b0] sm:$0xff]   ;;  %v193_v31 = vld [vmem:[%s3337_s28 + $0xb8] sm:$0x3] }
  0x3f   : > { %2703 = vmatpush3.bf16.msra.mxu0 %v3089_v13  ;;  %v319_v44 = vrot.slane %v317_v33, 1  ;;  %v331_v3 = vrot.slane %v329_v55, 1  ;;  %v504_v13 = vsel %vm501_vm1, %v502_v15, %v503_v59  ;;  %v505_v33 = vrot.slane %v3387_v43, 1  ;;  %v3101_v15 = vld [vmem:[%s4718_s1 + $0x1a8] sm:$0xff]  }
  0x40   : > { %v322_v47 = vshrl.u32 %v3551_v35, 16  ;;  %v324_v49 = vshll.u32 %v3551_v35, 16  ;;  %2704 = vmatprep.subr.bf16.mxu0 %v3092_v36  ;;  %v194_v36 = vld [vmem:[%s3337_s28 + $0xc0] sm:$0xff] }
  0x41   : > { %2593 = vmatpush3.bf16.msra.mxu1 %v3077_v37  ;;  %v314_v37 = vrot.slane %v312_v29, 1  ;;  %v3607_v29 = vpack.c.bf16 %v192_v8, %v191_v7  ;;  %v197_v7 = vld [vmem:[%s3337_s28 + $0xd8] sm:$0xff] }
  0x42   : > { %2594 = vmatprep.subr.bf16.mxu1 %v3078_v54  ;;  %v326_v60 = vrot.slane %v324_v49, 1  ;;  %v3626_v49 = vpack.c.bf16 %v193_v31, %v193_v31 }
  0x43   : > { %v315_v54 = vor.u32 %v314_v37, %v310_v28  ;;  %2705 = vmatpush3.bf16.msra.mxu0 %v3093_v40  ;;  %v338_v28 = vrot.slane %v336_v4, 1  ;;  %v3100_v37 = vld [vmem:[%s4718_s1 + $0x110] sm:$0xff]   ;;  %v346_v59 = vshrl.u32 %v3607_v29, 16  ;;  %v508_v4 = vrot.slane %v3423_v6, 1 }
  0x44   : > { %1397 = vmatmul.mubr.bf16.gmra.mxu0 %v3423_v6  ;;  %1493 = vmatmul.mubr.bf16.gmra.mxu1 %v3435_v12 }
  0x45   : > { %2595 = vmatpush3.bf16.msra.mxu1 %v3080_v58  ;;  %1404 = vmatprep.mubr.bf16.mxu0 %v3519_v11  ;;  %v190_v58 = vld [vmem:[%s3337_s28 + $0xa0] sm:$0x3]  ;;  %v3576_v63 = vsel %vm260_vm0, %v315_v54, %v319_v44  ;;  %v195_v44 = vld [vmem:[%s3337_s28 + $0xc8] sm:$0xff]  ;;  %v3634_v54 = vsel %vm501_vm1, %v505_v33, %v506_v34  ;;  %v3109_v34 = vld [vmem:[%s4718_s1 + $0x198] sm:$0xff]  }
  0x46   : > { %2596 = vmatprep.subr.bf16.mxu1 %v3082_v2  ;;  %1500 = vmatprep.mubr.bf16.mxu1 %v3528_v22  ;;  %v3580_v0 = vpack.c.bf16 %v190_v58, %v190_v58  ;;  %v327_v2 = vor.u32 %v326_v60, %v322_v47  ;;  %v3636_v55 = vpack.c.bf16 %v195_v44, %v194_v36  ;;  %v199_v33 = vld [vmem:[%s3337_s28 + $0xe8] sm:$0x3]  ;;  %v512_v44 = vrot.slane %v3487_v50, 1 }
  0x48   : > { %v341_v18 = vshll.u32 %v3580_v0, 16 }
  0x49   : > { %2597 = vmatpush3.bf16.msra.mxu1 %v3083_v5  ;;  %v3096_v5 = vld [vmem:[%s4718_s1 + $0x158] sm:$0xff]  }
  0x4a   : > { %2598 = vmatprep.subr.bf16.mxu1 %v3084_v25  ;;  %2706 = vmatprep.subr.bf16.mxu0 %v3096_v5  ;;  %v3604_v25 = vsel %vm260_vm0, %v327_v2, %v331_v3  ;;  %v343_v40 = vrot.slane %v341_v18, 1  ;;  %v3104_v2 = vld [vmem:[%s4718_s1 + $0x1e0] sm:$0xff]   ;;  %v3657_v3 = vpack.c.bf16 %v196_v51, %v196_v51  ;;  %v509_v5 = vrot.slane %v3432_v10, 1  ;;  %v3111_v51 = vld [vmem:[%s4718_s1 + $0x1d0] sm:$0xff]  }
  0x4b   : > { %2707 = vmatpush3.bf16.msra.mxu0 %v3097_v14  ;;  %v360_v14 = vshll.u32 %v3636_v55, 16  ;;  %v3105_v18 = vld [vmem:[%s4718_s1 + $0x1a0] sm:$0xff]   ;;  %v358_v10 = vshrl.u32 %v3636_v55, 16 }
  0x4c   : > { %1405 = vmatmul.mubr.bf16.gmra.mxu0 %v3482_v45  ;;  %1501 = vmatmul.mubr.bf16.gmra.mxu1 %v3490_v52  ;;  %v3681_v31 = vsel %vm501_vm1, %v508_v4, %v509_v5  ;;  %v202_v5 = vld [vmem:[%s3337_s28 + $0x100] sm:$0x3] }
  0x4d   : > { %2599 = vmatpush3.bf16.msra.mxu1 %v3085_v27  ;;  %1541 = vmatprep.mubr.bf16.mxu1 %v3387_v43  ;;  %v334_v27 = vshrl.u32 %v3570_v61, 16  ;;  %v348_v43 = vshll.u32 %v3607_v29, 16 }
  0x4e   : > { %2600 = vmatprep.subr.bf16.mxu1 %v3086_v32  ;;  %1412 = vmatprep.mubr.bf16.mxu0 %v3576_v63  ;;  %v3098_v32 = vld [vmem:[%s4718_s1 + $0x150] sm:$0xff]  }
  0x4f   : > { %v339_v47 = vor.u32 %v338_v28, %v334_v27  ;;  %2708 = vmatprep.subr.bf16.mxu0 %v3098_v32  ;;  %v350_v60 = vrot.slane %v348_v43, 1  ;;  %v365_v27 = vshll.u32 %v3657_v3, 16  ;;  %v3107_v28 = vld [vmem:[%s4718_s1 + $0x100] sm:$0xff]   ;;  %v362_v32 = vrot.slane %v360_v14, 1 }
  0x50   : > { %2709 = vmatpush3.bf16.msra.mxu0 %v3100_v37  ;;  %v3696_v43 = vpack.c.bf16 %v199_v33, %v199_v33  ;;  %v3118_v33 = vld [vmem:[%s4718_s1 + $0x180] sm:$0xff]  }
  0x51   : > { %2601 = vmatpush3.bf16.msra.mxu1 %v3088_v62  ;;  %v3642_v58 = vsel %vm260_vm0, %v339_v47, %v343_v40  ;;  %v353_v62 = vshll.u32 %v3626_v49, 16  ;;  %2710 = vmatprep.subr.bf16.mxu0 %v3102_v56  ;;  %v351_v8 = vor.u32 %v350_v60, %v346_v59  ;;  %v511_v40 = vrot.slane %v3482_v45, 1  ;;  %v200_v56 = vld [vmem:[%s3337_s28 + $0xf0] sm:$0xff] }
  0x52   : > { %2810 = vmatprep.subr.bf16.mxu1 %v3090_v1  ;;  %v3103_v1 = vld [vmem:[%s4718_s1 + $0x108] sm:$0xff]   ;;  %v367_v47 = vrot.slane %v365_v27, 1  ;;  %v363_v59 = vor.u32 %v362_v32, %v358_v10  ;;  %v3112_v60 = vld [vmem:[%s4718_s1 + $0x190] sm:$0xff]  }
  0x53   : > { %v3721_v4 = vsel %vm501_vm1, %v511_v40, %v512_v44  ;;  %v203_v27 = vld [vmem:[%s3337_s28 + $0x108] sm:$0xff] }
  0x54   : > { %1413 = vmatmul.mubr.bf16.gmra.mxu0 %v3531_v24  ;;  %1542 = vmatmul.mubr.bf16.vlgmr.msra.gmra.mxu1 %v504_v13  ;;  %v355_v13 = vrot.slane %v353_v62, 1  ;;  %v3725_v14 = vsel %vm260_vm0, %v363_v59, %v367_v47  ;;  %v205_v59 = vld [vmem:[%s3337_s28 + $0x118] sm:$0x3] }
  0x55   : > { %2811 = vmatpush3.bf16.msra.mxu1 %v3091_v17  ;;  %1420 = vmatprep.mubr.bf16.mxu0 %v3604_v25  ;;  %v198_v17 = vld [vmem:[%s3337_s28 + $0xe0] sm:$0xff] }
  0x56   : > { %1549 = vmatprep.mubr.bf16.mxu1 %v3423_v6  ;;  %2812 = vmatprep.subr.bf16.mxu1 %v3094_v23  ;;  %v3106_v23 = vld [vmem:[%s4718_s1 + $0x140] sm:$0xff]   ;;  %v3688_v36 = vsel %vm260_vm0, %v351_v8, %v355_v13  ;;  %v3690_v37 = vpack.c.bf16 %v198_v17, %v197_v7  ;;  %v3115_v13 = vld [vmem:[%s4718_s1 + $0x188] sm:$0xff]  }
  0x57   : > { %2711 = vmatpush3.bf16.msra.mxu0 %v3103_v1  ;;  %v377_v1 = vshll.u32 %v3696_v43, 16  ;;  %v3117_v17 = vld [vmem:[%s4718_s1 + $0x1c0] sm:$0xff]  }
  0x58   : > { %2712 = vmatprep.subr.bf16.mxu0 %v3106_v23  ;;  %v372_v50 = vshll.u32 %v3690_v37, 16  ;;  %v370_v62 = vshrl.u32 %v3690_v37, 16  ;;  %v515_v23 = vrot.slane %v3537_v26, 1 }
  0x59   : > { %2813 = vmatpush3.bf16.msra.mxu1 %v3095_v30  ;;  %v3108_v30 = vld [vmem:[%s4718_s1 + $0x1d8] sm:$0xff]   ;;  %v379_v10 = vrot.slane %v377_v1, 1  ;;  %v3766_v1 = vpack.c.bf16 %v205_v59, %v205_v59  ;;  %v530_v59 = vrot.slane %v3696_v43, 1 }
  0x5a   : > { %2814 = vmatprep.subr.bf16.mxu1 %v3099_v46  ;;  %v3701_v46 = vld [vmem:[%s4718_s1 + $0x238] sm:$0xff]   ;;  %v374_v7 = vrot.slane %v372_v50, 1  ;;  %v517_v50 = vrot.slane %v3551_v35, 1 }
  0x5b   : > { %2713 = vmatpush3.bf16.msra.mxu0 %v3107_v28 }
  0x5c   : > { %1421 = vmatmul.mubr.bf16.gmra.mxu0 %v3551_v35  ;;  %1550 = vmatmul.mubr.bf16.gmra.mxu1 %v3634_v54  ;;  %v375_v28 = vor.u32 %v374_v7, %v370_v62 }
  0x5d   : > { %1428 = vmatprep.mubr.bf16.mxu0 %v3642_v58  ;;  %1557 = vmatprep.mubr.bf16.mxu1 %v3482_v45 }
  0x5e   : > { %2815 = vmatpush3.bf16.msra.mxu1 %v3101_v15  ;;  %2946 = vmatprep.subr.bf16.mxu0 %v3701_v46  ;;  %v201_v15 = vld [vmem:[%s3337_s28 + $0xf8] sm:$0xff]  ;;  %v3754_v44 = vsel %vm260_vm0, %v375_v28, %v379_v10 }
  0x5f   : > { %2816 = vmatprep.subr.bf16.mxu1 %v3104_v2  ;;  %v3114_v2 = vld [vmem:[%s4718_s1 + $0x1c8] sm:$0xff]   ;;  %v3727_v8 = vpack.c.bf16 %v201_v15, %v200_v56 }
  0x61   : > { %v384_v32 = vshll.u32 %v3727_v8, 16  ;;  %v382_v26 = vshrl.u32 %v3727_v8, 16  ;;  %v532_v43 = vrot.slane %v3727_v8, 1 }
  0x62   : > { %2817 = vmatpush3.bf16.msra.mxu1 %v3105_v18  ;;  %v514_v18 = vrot.slane %v3531_v24, 1 }
  0x63   : > { %2818 = vmatprep.subr.bf16.mxu1 %v3108_v30  ;;  %v3742_v30 = vpack.c.bf16 %v202_v5, %v202_v5  ;;  %v386_v47 = vrot.slane %v384_v32, 1 }
  0x64   : > { %1429 = vmatmul.mubr.bf16.gmra.mxu0 %v3570_v61  ;;  %1558 = vmatmul.mubr.bf16.gmra.mxu1 %v3681_v31  ;;  %v3750_v40 = vsel %vm501_vm1, %v514_v18, %v515_v23  ;;  %v401_v18 = vshll.u32 %v3766_v1, 16  ;;  %v521_v23 = vrot.slane %v3580_v0, 1  ;;  %v524_v0 = vrot.slane %v3626_v49, 1  ;;  %v3113_v49 = vld [vmem:[%s4718_s1 + $0x230] sm:$0xff]  }
  0x65   : > { %1436 = vmatprep.mubr.bf16.mxu0 %v3688_v36  ;;  %1565 = vmatprep.mubr.bf16.mxu1 %v3531_v24  ;;  %v387_v62 = vor.u32 %v386_v47, %v382_v26  ;;  %v526_v26 = vrot.slane %v3636_v55, 1  ;;  %v527_v47 = vrot.slane %v3657_v3, 1  ;;  %v3116_v3 = vld [vmem:[%s4718_s1 + $0x228] sm:$0xff]  }
  0x66   : > { %2819 = vmatpush3.bf16.msra.mxu1 %v3109_v34  ;;  %v204_v34 = vld [vmem:[%s3337_s28 + $0x110] sm:$0xff] }
  0x67   : > { %2820 = vmatprep.subr.bf16.mxu1 %v3111_v51  ;;  %v389_v51 = vshll.u32 %v3742_v30, 16  ;;  %v3757_v56 = vpack.c.bf16 %v204_v34, %v203_v27  ;;  %v403_v27 = vrot.slane %v401_v18, 1  ;;  %v3123_v18 = vld [vmem:[%s4718_s1 + $0x200] sm:$0xff]  }
  0x69   : > { %v391_v15 = vrot.slane %v389_v51, 1  ;;  %v3805_v51 = vsel %vm501_vm1, %v526_v26, %v527_v47  ;;  %v218_v26 = vld [vmem:[%s3337_s28 + $0x180] sm:$0xff]  ;;  %v219_v47 = vld [vmem:[%s3337_s28 + $0x188] sm:$0xff] }
  0x6a   : > { %2821 = vmatpush3.bf16.msra.mxu1 %v3112_v60  ;;  %v518_v60 = vrot.slane %v3556_v39, 1  ;;  %v520_v39 = vrot.slane %v3570_v61, 1 }
  0x6b   : > { %2822 = vmatprep.subr.bf16.mxu1 %v3114_v2  ;;  %v396_v2 = vshll.u32 %v3757_v56, 16  ;;  %v3773_v7 = vsel %vm260_vm0, %v387_v62, %v391_v15  ;;  %v3121_v15 = vld [vmem:[%s4718_s1 + $0x210] sm:$0xff]  }
  0x6c   : > { %1437 = vmatmul.mubr.bf16.gmra.mxu0 %v3607_v29  ;;  %1566 = vmatmul.mubr.bf16.gmra.mxu1 %v3721_v4  ;;  %v3770_v5 = vsel %vm501_vm1, %v517_v50, %v518_v60  ;;  %v3784_v28 = vsel %vm501_vm1, %v520_v39, %v521_v23  ;;  %v3120_v60 = vld [vmem:[%s4718_s1 + $0x218] sm:$0xff]   ;;  %v539_v39 = vrot.slane %v3357_v20, 1  ;;  %v542_v20 = vrot.slane %v3404_v53, 1 }
  0x6d   : > { %1444 = vmatprep.mubr.bf16.mxu0 %v3725_v14  ;;  %1573 = vmatprep.mubr.bf16.mxu1 %v3551_v35  ;;  %v3885_v53 = vpack.c.bf16 %v219_v47, %v218_v26 }
  0x6e   : > { %2823 = vmatpush3.bf16.msra.mxu1 %v3115_v13  ;;  %v394_v13 = vshrl.u32 %v3757_v56, 16 }
  0x6f   : > { %2824 = vmatprep.subr.bf16.mxu1 %v3117_v17  ;;  %v398_v17 = vrot.slane %v396_v2, 1  ;;  %v536_v2 = vrot.slane %v3766_v1, 1  ;;  %v538_v1 = vrot.slane %v3355_v19, 1 }
  0x71   : > { %v399_v10 = vor.u32 %v398_v17, %v394_v13  ;;  %v3122_v13 = vld [vmem:[%s4718_s1 + $0x208] sm:$0xff]   ;;  %v3863_v23 = vsel %vm501_vm1, %v538_v1, %v539_v39 }
  0x72   : > { %2825 = vmatpush3.bf16.msra.mxu1 %v3118_v33  ;;  %v523_v33 = vrot.slane %v3607_v29, 1 }
  0x73   : > { %v3787_v32 = vsel %vm260_vm0, %v399_v10, %v403_v27  ;;  %v541_v10 = vrot.slane %v3394_v48, 1 }
  0x74   : > { %1445 = vmatmul.mubr.bf16.gmra.mxu0 %v3636_v55  ;;  %1574 = vmatmul.mubr.bf16.gmra.mxu1 %v3750_v40  ;;  %v3796_v34 = vsel %vm501_vm1, %v523_v33, %v524_v0  ;;  %v544_v33 = vrot.slane %v3435_v12, 1  ;;  %v545_v0 = vrot.slane %v3445_v21, 1 }
  0x75   : > { %1452 = vmatprep.mubr.bf16.mxu0 %v3754_v44  ;;  %1581 = vmatprep.mubr.bf16.mxu1 %v3570_v61  ;;  %v3872_v27 = vsel %vm501_vm1, %v541_v10, %v542_v20  ;;  %v567_v20 = vshrl.u32 %v3885_v53, 16 }
  0x7c   : > { %1453 = vmatmul.mubr.bf16.gmra.mxu0 %v3690_v37  ;;  %1582 = vmatmul.mubr.bf16.gmra.mxu1 %v3770_v5 }
  0x7d   : > { %1460 = vmatprep.mubr.bf16.mxu0 %v3773_v7  ;;  %1589 = vmatprep.mubr.bf16.mxu1 %v3607_v29 }
  0x84   : > { %1461 = vmatmul.mubr.bf16.gmra.mxu0 %v3727_v8  ;;  %1590 = vmatmul.mubr.bf16.gmra.mxu1 %v3784_v28 }
  0x85   : > { %1468 = vmatprep.mubr.bf16.mxu0 %v3787_v32  ;;  %1597 = vmatprep.mubr.bf16.mxu1 %v3636_v55 }
  0x8c   : > { %1469 = vmatmul.mubr.bf16.gmra.mxu0 %v3757_v56  ;;  %1598 = vmatmul.mubr.bf16.gmra.mxu1 %v3796_v34 }
  0x8d   : > { %1605 = vmatprep.mubr.bf16.mxu1 %v3690_v37  ;;  %1702 = vmatprep.mubr.bf16.mxu0 %v3634_v54  ;;  %v529_v54 = vrot.slane %v3690_v37, 1 }
  0x8f   : > { %v3821_v50 = vsel %vm501_vm1, %v529_v54, %v530_v59  ;;  %v547_v54 = vrot.slane %v3490_v52, 1  ;;  %v548_v59 = vrot.slane %v3498_v57, 1 }
  0x91   : > { %v3894_v21 = vsel %vm501_vm1, %v547_v54, %v548_v59 }
  0x94   : > { %1606 = vmatmul.mubr.bf16.gmra.mxu1 %v3805_v51  ;;  %1703 = vmatmul.mubr.bf16.vlgmr.msra.gmra.mxu0 %v3430_v9  ;;  %v3119_v9 = vld [vmem:[%s4718_s1 + $0x220] sm:$0xff]  }
  0x95   : > { %2947 = vmatpush3.bf16.msra.mxu0 %v3701_v46  ;;  %1613 = vmatprep.mubr.bf16.mxu1 %v3727_v8  ;;  %v533_v46 = vrot.slane %v3742_v30, 1  ;;  %v535_v30 = vrot.slane %v3757_v56, 1 }
  0x96   : > { %1710 = vmatprep.mubr.bf16.mxu0 %v3681_v31  ;;  %2948 = vmatprep.subr.bf16.mxu0 %v3113_v49 }
  0x97   : > { %v3836_v62 = vsel %vm501_vm1, %v532_v43, %v533_v46  ;;  %v3851_v17 = vsel %vm501_vm1, %v535_v30, %v536_v2  ;;  %v581_v2 = vrot.slane %v3885_v53, 1 }
  0x99   : > { %2949 = vmatpush3.bf16.msra.mxu0 %v3113_v49  ;;  %v3883_v49 = vsel %vm501_vm1, %v544_v33, %v545_v0 }
  0x9a   : > { %2950 = vmatprep.subr.bf16.mxu0 %v3116_v3 }
  0x9c   : > { %1614 = vmatmul.mubr.bf16.gmra.mxu1 %v3821_v50  ;;  %1711 = vmatmul.mubr.bf16.gmra.mxu0 %v3472_v38 }
  0x9d   : > { %1621 = vmatprep.mubr.bf16.mxu1 %v3757_v56  ;;  %1718 = vmatprep.mubr.bf16.mxu0 %v3721_v4 }
  0x9e   : > { %2951 = vmatpush3.bf16.msra.mxu0 %v3116_v3 }
  0x9f   : > { %2952 = vmatprep.subr.bf16.mxu0 %v3119_v9 }
  0xa2   : > { %2953 = vmatpush3.bf16.msra.mxu0 %v3119_v9 }
  0xa3   : > { %2954 = vmatprep.subr.bf16.mxu0 %v3120_v60 }
  0xa4   : > { %1622 = vmatmul.mubr.bf16.gmra.mxu1 %v3836_v62  ;;  %1719 = vmatmul.mubr.bf16.gmra.mxu0 %v3519_v11 }
  0xa5   : > { %1629 = vmatprep.mubr.bf16.mxu1 %v3355_v19  ;;  %1726 = vmatprep.mubr.bf16.mxu0 %v3750_v40 }
  0xa6   : > { %2955 = vmatpush3.bf16.msra.mxu0 %v3120_v60 }
  0xa7   : > { %2956 = vmatprep.subr.bf16.mxu0 %v3121_v15 }
  0xaa   : > { %2957 = vmatpush3.bf16.msra.mxu0 %v3121_v15 }
  0xab   : > { %2958 = vmatprep.subr.bf16.mxu0 %v3122_v13 }
  0xac   : > { %1630 = vmatmul.mubr.bf16.gmra.mxu1 %v3851_v17  ;;  %1727 = vmatmul.mubr.bf16.gmra.mxu0 %v3576_v63 }
  0xad   : > { %1637 = vmatprep.mubr.bf16.mxu1 %v3394_v48  ;;  %1734 = vmatprep.mubr.bf16.mxu0 %v3770_v5 }
  0xae   : > { %2959 = vmatpush3.bf16.msra.mxu0 %v3122_v13 }
  0xaf   : > { %2960 = vmatprep.subr.bf16.mxu0 %v3123_v18 }
  0xb2   : > { %2961 = vmatpush3.bf16.msra.mxu0 %v3123_v18 }
  0xb4   : > { %1638 = vmatmul.mubr.bf16.gmra.mxu1 %v3863_v23  ;;  %1735 = vmatmul.mubr.bf16.gmra.mxu0 %v3604_v25 }
  0xb5   : > { %1645 = vmatprep.mubr.bf16.mxu1 %v3435_v12  ;;  %1742 = vmatprep.mubr.bf16.mxu0 %v3784_v28 }
  0xbc   : > { %1646 = vmatmul.mubr.bf16.gmra.mxu1 %v3872_v27  ;;  %1743 = vmatmul.mubr.bf16.gmra.mxu0 %v3642_v58 }
  0xbd   : > { %1653 = vmatprep.mubr.bf16.mxu1 %v3490_v52  ;;  %1750 = vmatprep.mubr.bf16.mxu0 %v3796_v34 }
  0xc4   : > { %1654 = vmatmul.mubr.bf16.gmra.mxu1 %v3883_v49  ;;  %1751 = vmatmul.mubr.bf16.gmra.mxu0 %v3688_v36 }
  0xc5   : > { %1661 = vmatprep.mubr.bf16.mxu1 %v3885_v53  ;;  %1758 = vmatprep.mubr.bf16.mxu0 %v3805_v51 }
  0xcc   : > { %1662 = vmatmul.mubr.bf16.gmra.mxu1 %v3894_v21  ;;  %1759 = vmatmul.mubr.bf16.gmra.mxu0 %v3725_v14 }
  0xcd   : > { %1766 = vmatprep.mubr.bf16.mxu0 %v3821_v50  ;;  %1863 = vmatprep.mubr.bf16.mxu1 %v3472_v38 }
  0xd4   : > { %1767 = vmatmul.mubr.bf16.gmra.mxu0 %v3754_v44  ;;  %1864 = vmatmul.mubr.bf16.vlgmr.msra.gmra.mxu1 %v3423_v6 }
  0xd5   : > { %1774 = vmatprep.mubr.bf16.mxu0 %v3836_v62  ;;  %1871 = vmatprep.mubr.bf16.mxu1 %v3519_v11 }
  0xdc   : > { %1775 = vmatmul.mubr.bf16.gmra.mxu0 %v3773_v7  ;;  %1872 = vmatmul.mubr.bf16.gmra.mxu1 %v3482_v45 }
  0xdd   : > { %1782 = vmatprep.mubr.bf16.mxu0 %v3851_v17  ;;  %1879 = vmatprep.mubr.bf16.mxu1 %v3576_v63 }
  0xe4   : > { %1783 = vmatmul.mubr.bf16.gmra.mxu0 %v3787_v32  ;;  %1880 = vmatmul.mubr.bf16.gmra.mxu1 %v3531_v24 }
  0xe5   : > { %1790 = vmatprep.mubr.bf16.mxu0 %v3863_v23  ;;  %1887 = vmatprep.mubr.bf16.mxu1 %v3604_v25 }
  0xec   : > { %1791 = vmatmul.mubr.bf16.gmra.mxu0 %v3384_v41  ;;  %1888 = vmatmul.mubr.bf16.gmra.mxu1 %v3551_v35  ;;  %v220_v35 = vld [vmem:[%s3337_s28 + $0x190] sm:$0x3] }
  0xed   : > { %1798 = vmatprep.mubr.bf16.mxu0 %v3872_v27  ;;  %1895 = vmatprep.mubr.bf16.mxu1 %v3642_v58  ;;  %v257_v9 = vpack.c.bf16 %v220_v35, %v220_v35 }
  0xef   : > { %v582_v13 = vrot.slane %v257_v9, 1  ;;  %v574_v33 = vshll.u32 %v257_v9, 16 }
  0xf4   : > { %v2490_v6 = vpop.f32.mrf.mxu0  ;;  %v2562_v38 = vpop.f32.mrf.mxu1  ;;  %1799 = vmatmul.mubr.bf16.gmra.mxu0 %v3441_v16  ;;  %1896 = vmatmul.mubr.bf16.gmra.mxu1 %v3570_v61 }
  0xf5   : > { %1806 = vmatprep.mubr.bf16.mxu0 %v3883_v49  ;;  %1903 = vmatprep.mubr.bf16.mxu1 %v3688_v36  ;;  %v569_v36 = vshll.u32 %v3885_v53, 16 }
  0xf6   : > { %v2491_v45 = vpop.f32.mrf.mxu0  ;;  %v2563_v57 = vpop.f32.mrf.mxu1 }
  0xf7   : > { %v3920_v11 = vadd.f32 %v2491_v45, %v2490_v6  ;;  %v3922_v24 = vadd.f32 %v2563_v57, %v2562_v38  ;;  %v576_v45 = vrot.slane %v574_v33, 1 }
  0xf8   : > { %v2493_v63 = vpop.f32.mrf.mxu0  ;;  %v2565_v25 = vpop.f32.mrf.mxu1 }
  0xfa   : > { %v2494_v58 = vpop.f32.mrf.mxu0  ;;  %v2566_v3 = vpop.f32.mrf.mxu1 }
  0xfb   : > { %v3925_v43 = vadd.f32 %v2494_v58, %v2493_v63  ;;  %v3927_v46 = vadd.f32 %v2566_v3, %v2565_v25 }
  0xfc   : > { %v2496_v61 = vpop.f32.mrf.mxu0  ;;  %v2568_v60 = vpop.f32.mrf.mxu1  ;;  %1807 = vmatmul.mubr.bf16.gmra.mxu0 %v3479_v42  ;;  %1904 = vmatmul.mubr.bf16.gmra.mxu1 %v3607_v29  ;;  %v571_v29 = vrot.slane %v569_v36, 1 }
  0xfd   : > { %1814 = vmatprep.mubr.bf16.mxu0 %v3894_v21  ;;  %1911 = vmatprep.mubr.bf16.mxu1 %v3725_v14  ;;  %v3941_v14 = vsel %vm501_vm1, %v581_v2, %v582_v13 }
  0xfe   : > { %v2497_v15 = vpop.f32.mrf.mxu0  ;;  %v2569_v30 = vpop.f32.mrf.mxu1  ;;  %v572_v38 = vor.u32 %v571_v29, %v567_v20 }
  0xff   : > { %v3935_v18 = vadd.f32 %v2497_v15, %v2496_v61  ;;  %v3937_v1 = vadd.f32 %v2569_v30, %v2568_v60 }
 0x100   : > { %v2499_v39 = vpop.f32.mrf.mxu0  ;;  %v2571_v10 = vpop.f32.mrf.mxu1  ;;  %v3956_v9 = vsel %vm260_vm0, %v572_v38, %v576_v45 }
 0x102   : > { %v2500_v0 = vpop.f32.mrf.mxu0  ;;  %v2572_v26 = vpop.f32.mrf.mxu1 }
 0x103   : > { %v3943_v47 = vadd.f32 %v2500_v0, %v2499_v39  ;;  %v3945_v54 = vadd.f32 %v2572_v26, %v2571_v10 }
 0x104   : > { %v2502_v59 = vpop.f32.mrf.mxu0  ;;  %v2574_v6 = vpop.f32.mrf.mxu1  ;;  %1815 = vmatmul.mubr.bf16.gmra.mxu0 %v3528_v22  ;;  %1912 = vmatmul.mubr.bf16.gmra.mxu1 %v3636_v55 }
 0x105   : > { %1822 = vmatprep.mubr.bf16.mxu0 %v3941_v14  ;;  %1919 = vmatprep.mubr.bf16.mxu1 %v3754_v44 }
 0x106   : > { %v2503_v57 = vpop.f32.mrf.mxu0  ;;  %v2575_v35 = vpop.f32.mrf.mxu1 }
 0x107   : > { %v3951_v63 = vadd.f32 %v2503_v57, %v2502_v59  ;;  %v3953_v25 = vadd.f32 %v2575_v35, %v2574_v6 }
 0x108   : > { %v2505_v58 = vpop.f32.mrf.mxu0  ;;  %v2577_v3 = vpop.f32.mrf.mxu1 }
 0x10a   : > { %v2506_v61 = vpop.f32.mrf.mxu0  ;;  %v2578_v60 = vpop.f32.mrf.mxu1 }
 0x10b   : > { %v3958_v55 = vadd.f32 %v2506_v61, %v2505_v58  ;;  %v3960_v36 = vadd.f32 %v2578_v60, %v2577_v3 }
 0x10c   : > { %v2508_v44 = vpop.f32.mrf.mxu0  ;;  %v2580_v15 = vpop.f32.mrf.mxu1  ;;  %1823 = vmatmul.mubr.bf16.gmra.mxu0 %v3956_v9  ;;  %1920 = vmatmul.mubr.bf16.gmra.mxu1 %v3690_v37 }
 0x10d   : > { %1927 = vmatprep.mubr.bf16.mxu1 %v3773_v7  ;;  %2962 = vmatprep.mubr.bf16.mxu0 %v3681_v31  ;;  %v3981_v31 = vld [vmem:[%s4719_s2] ss:$0 sm:$0xff] }
 0x10e   : > { %v2509_v30 = vpop.f32.mrf.mxu0  ;;  %v2581_v2 = vpop.f32.mrf.mxu1  ;;  %v1383_v38 = vadd.f32 %v3920_v11, %v3981_v31 }
 0x10f   : > { %v3966_v13 = vadd.f32 %v2509_v30, %v2508_v44  ;;  %v3968_v39 = vadd.f32 %v2581_v2, %v2580_v15 }
 0x110   : > { %v2511_v10 = vpop.f32.mrf.mxu0  ;;  %v2583_v20 = vpop.f32.mrf.mxu1 }
 0x112   : > { %v2512_v29 = vpop.f32.mrf.mxu0  ;;  %v2584_v33 = vpop.f32.mrf.mxu1 }
 0x113   : > { %v3970_v0 = vadd.f32 %v2512_v29, %v2511_v10  ;;  %v3972_v26 = vadd.f32 %v2584_v33, %v2583_v20 }
 0x114   : > { %v2514_v59 = vpop.f32.mrf.mxu0  ;;  %v2602_v37 = vpop.f32.mrf.mxu1  ;;  %1928 = vmatmul.mubr.bf16.gmra.mxu1 %v3727_v8  ;;  %2963 = vmatmul.mubr.bf16.vlgmr.msra.gmra.mxu0 %v3721_v4 }
 0x115   : > { %1935 = vmatprep.mubr.bf16.mxu1 %v3787_v32  ;;  %2966 = vmatprep.mubr.bf16.mxu0 %v3750_v40  ;;  %v1386_v40 = vadd.f32 %v3925_v43, %v3981_v31  ;;  %v1391_v43 = vadd.f32 %v3935_v18, %v3981_v31 }
 0x116   : > { %v2515_v7 = vpop.f32.mrf.mxu0  ;;  %v2603_v6 = vpop.f32.mrf.mxu1 }
 0x117   : > { %v3985_v45 = vadd.f32 %v2515_v7, %v2514_v59  ;;  %v2604_v57 = vadd.f32 %v2603_v6, %v2602_v37  ;;  %v1394_v59 = vadd.f32 %v3943_v47, %v3981_v31  ;;  %v1399_v47 = vadd.f32 %v3951_v63, %v3981_v31 }
 0x118   : > { %v2517_v8 = vpop.f32.mrf.mxu0  ;;  %v2605_v35 = vpop.f32.mrf.mxu1 }
 0x119   : > { %v3987_v4 = vadd.f32 %v2604_v57, %v1383_v38 }
 0x11a   : > { %v2518_v32 = vpop.f32.mrf.mxu0  ;;  %v2606_v58 = vpop.f32.mrf.mxu1 }
 0x11b   : > { %v3991_v3 = vadd.f32 %v2518_v32, %v2517_v8  ;;  %v2607_v61 = vadd.f32 %v2606_v58, %v2605_v35 }
 0x11c   : > { %v2520_v60 = vpop.f32.mrf.mxu0  ;;  %v2608_v44 = vpop.f32.mrf.mxu1  ;;  %1936 = vmatmul.mubr.bf16.gmra.mxu1 %v3757_v56  ;;  %2967 = vmatmul.mubr.bf16.gmra.mxu0 %v3770_v5 }
 0x11d   : > { %v3995_v11 = vadd.f32 %v2607_v61, %v1386_v40  ;;  %1943 = vmatprep.mubr.bf16.mxu1 %v3384_v41  ;;  %2970 = vmatprep.mubr.bf16.mxu0 %v3784_v28 }
 0x11e   : > { %v2521_v15 = vpop.f32.mrf.mxu0  ;;  %v2609_v30 = vpop.f32.mrf.mxu1 }
 0x11f   : > { %v4001_v2 = vadd.f32 %v2521_v15, %v2520_v60  ;;  %v2610_v10 = vadd.f32 %v2609_v30, %v2608_v44 }
 0x120   : > { %v2523_v20 = vpop.f32.mrf.mxu0  ;;  %v2611_v29 = vpop.f32.mrf.mxu1 }
 0x121   : > { %v4003_v33 = vadd.f32 %v2610_v10, %v1391_v43  ;;  %v221_v10 = vld [vmem:[%s3337_s28 + $0x198] sm:$0xff] }
 0x122   : > { %v2524_v56 = vpop.f32.mrf.mxu0  ;;  %v2612_v5 = vpop.f32.mrf.mxu1 }
 0x123   : > { %v4007_v41 = vadd.f32 %v2524_v56, %v2523_v20  ;;  %v2613_v28 = vadd.f32 %v2612_v5, %v2611_v29  ;;  %v222_v20 = vld [vmem:[%s3337_s28 + $0x1a0] sm:$0xff] }
 0x124   : > { %v2526_v37 = vpop.f32.mrf.mxu0  ;;  %v2614_v7 = vpop.f32.mrf.mxu1  ;;  %1944 = vmatmul.mubr.bf16.gmra.mxu1 %v3355_v19  ;;  %2971 = vmatmul.mubr.bf16.gmra.mxu0 %v3796_v34 }
 0x125   : > { %v4011_v18 = vadd.f32 %v2613_v28, %v1394_v59  ;;  %1951 = vmatprep.mubr.bf16.mxu1 %v3441_v16  ;;  %2974 = vmatprep.mubr.bf16.mxu0 %v3805_v51  ;;  %v1402_v16 = vadd.f32 %v3958_v55, %v3981_v31  ;;  %v1407_v55 = vadd.f32 %v3966_v13, %v3981_v31  ;;  %v223_v13 = vld [vmem:[%s3337_s28 + $0x1a8] sm:$0x3] }
 0x126   : > { %v2527_v6 = vpop.f32.mrf.mxu0  ;;  %v2615_v38 = vpop.f32.mrf.mxu1 }
 0x127   : > { %v4017_v57 = vadd.f32 %v2527_v6, %v2526_v37  ;;  %v2616_v8 = vadd.f32 %v2615_v38, %v2614_v7 }
 0x128   : > { %v2529_v35 = vpop.f32.mrf.mxu0  ;;  %v2617_v32 = vpop.f32.mrf.mxu1 }
 0x129   : > { %v4019_v58 = vadd.f32 %v2616_v8, %v1399_v47  ;;  %v259_v8 = vpack.c.bf16 %v223_v13, %v223_v13 }
 0x12a   : > { %v2530_v19 = vpop.f32.mrf.mxu0  ;;  %v2618_v34 = vpop.f32.mrf.mxu1 }
 0x12b   : > { %v4023_v51 = vadd.f32 %v2530_v19, %v2529_v35  ;;  %v2619_v40 = vadd.f32 %v2618_v34, %v2617_v32  ;;  %v1415_v35 = vadd.f32 %v3985_v45, %v3981_v31 }
 0x12c   : > { %v2532_v61 = vpop.f32.mrf.mxu0  ;;  %v2620_v60 = vpop.f32.mrf.mxu1  ;;  %1952 = vmatmul.mubr.bf16.gmra.mxu1 %v3394_v48  ;;  %2975 = vmatmul.mubr.bf16.gmra.mxu0 %v3821_v50 }
 0x12d   : > { %v4027_v63 = vadd.f32 %v2619_v40, %v1402_v16  ;;  %1959 = vmatprep.mubr.bf16.mxu1 %v3479_v42  ;;  %2978 = vmatprep.mubr.bf16.mxu0 %v3836_v62  ;;  %v4039_v42 = vpack.c.bf16 %v222_v20, %v221_v10  ;;  %v1410_v62 = vadd.f32 %v3970_v0, %v3981_v31 }
 0x12e   : > { %v2533_v44 = vpop.f32.mrf.mxu0  ;;  %v2621_v15 = vpop.f32.mrf.mxu1 }
 0x12f   : > { %v4033_v30 = vadd.f32 %v2533_v44, %v2532_v61  ;;  %v2622_v43 = vadd.f32 %v2621_v15, %v2620_v60  ;;  %v588_v0 = vshll.u32 %v4039_v42, 16  ;;  %v593_v61 = vshll.u32 %v259_v8, 16 }
 0x130   : > { %v2535_v48 = vpop.f32.mrf.mxu0  ;;  %v2623_v29 = vpop.f32.mrf.mxu1  ;;  %v1418_v60 = vadd.f32 %v3991_v3, %v3981_v31  ;;  %v1423_v3 = vadd.f32 %v4001_v2, %v3981_v31 }
 0x131   : > { %v4037_v50 = vadd.f32 %v2622_v43, %v1407_v55 }
 0x132   : > { %v2536_v56 = vpop.f32.mrf.mxu0  ;;  %v2624_v5 = vpop.f32.mrf.mxu1 }
 0x133   : > { %v4043_v59 = vadd.f32 %v2536_v56, %v2535_v48  ;;  %v2625_v28 = vadd.f32 %v2624_v5, %v2623_v29  ;;  %v595_v29 = vrot.slane %v593_v61, 1 }
 0x134   : > { %v2538_v37 = vpop.f32.mrf.mxu0  ;;  %v2626_v7 = vpop.f32.mrf.mxu1  ;;  %1960 = vmatmul.mubr.bf16.gmra.mxu1 %v3435_v12  ;;  %2979 = vmatmul.mubr.bf16.gmra.mxu0 %v3851_v17 }
 0x135   : > { %v4048_v6 = vadd.f32 %v2625_v28, %v1410_v62  ;;  %1967 = vmatprep.mubr.bf16.mxu1 %v3528_v22  ;;  %2982 = vmatprep.mubr.bf16.mxu0 %v3863_v23  ;;  %v586_v22 = vshrl.u32 %v4039_v42, 16  ;;  %v590_v23 = vrot.slane %v588_v0, 1  ;;  %v600_v0 = vrot.slane %v4039_v42, 1 }
 0x136   : > { %v2539_v38 = vpop.f32.mrf.mxu0  ;;  %v2627_v47 = vpop.f32.mrf.mxu1 }
 0x137   : > { %v4055_v32 = vadd.f32 %v2539_v38, %v2538_v37  ;;  %v2628_v19 = vadd.f32 %v2627_v47, %v2626_v7  ;;  %v591_v48 = vor.u32 %v590_v23, %v586_v22 }
 0x138   : > { %v2541_v12 = vpop.f32.mrf.mxu0  ;;  %v2629_v34 = vpop.f32.mrf.mxu1 }
 0x139   : > { %v4057_v17 = vadd.f32 %v2628_v19, %v1415_v35  ;;  %v601_v35 = vrot.slane %v259_v8, 1 }
 0x13a   : > { %v2542_v16 = vpop.f32.mrf.mxu0  ;;  %v2630_v40 = vpop.f32.mrf.mxu1 }
 0x13b   : > { %v4062_v44 = vadd.f32 %v2542_v16, %v2541_v12  ;;  %v2631_v15 = vadd.f32 %v2630_v40, %v2629_v34 }
 0x13c   : > { %v2544_v45 = vpop.f32.mrf.mxu0  ;;  %v2632_v55 = vpop.f32.mrf.mxu1  ;;  %1968 = vmatmul.mubr.bf16.gmra.mxu1 %v3490_v52  ;;  %2983 = vmatmul.mubr.bf16.gmra.mxu0 %v3872_v27 }
 0x13d   : > { %v4066_v43 = vadd.f32 %v2631_v15, %v1418_v60  ;;  %1975 = vmatprep.mubr.bf16.mxu1 %v3956_v9  ;;  %2986 = vmatprep.mubr.bf16.mxu0 %v3883_v49  ;;  %v596_v9 = vsel %vm260_vm0, %v591_v48, %v595_v29  ;;  %v1426_v49 = vadd.f32 %v4007_v41, %v3981_v31 }
 0x13e   : > { %v2545_v10 = vpop.f32.mrf.mxu0  ;;  %v2633_v20 = vpop.f32.mrf.mxu1  ;;  %v1431_v41 = vadd.f32 %v4017_v57, %v3981_v31 }
 0x13f   : > { %v4072_v56 = vadd.f32 %v2545_v10, %v2544_v45  ;;  %v2634_v5 = vadd.f32 %v2633_v20, %v2632_v55  ;;  %v1439_v20 = vadd.f32 %v4033_v30, %v3981_v31 }
 0x140   : > { %v2547_v62 = vpop.f32.mrf.mxu0  ;;  %v2635_v52 = vpop.f32.mrf.mxu1 }
 0x141   : > { %v4074_v28 = vadd.f32 %v2634_v5, %v1423_v3 }
 0x142   : > { %v2548_v27 = vpop.f32.mrf.mxu0  ;;  %v2636_v13 = vpop.f32.mrf.mxu1 }
 0x143   : > { %v4079_v37 = vadd.f32 %v2548_v27, %v2547_v62  ;;  %v2637_v7 = vadd.f32 %v2636_v13, %v2635_v52 }
 0x144   : > { %v2550_v38 = vpop.f32.mrf.mxu0  ;;  %v2638_v47 = vpop.f32.mrf.mxu1  ;;  %1976 = vmatmul.mubr.bf16.gmra.mxu1 %v3885_v53  ;;  %2987 = vmatmul.mubr.bf16.gmra.mxu0 %v3894_v21  ;;  %v602_v21 = vsel %vm501_vm1, %v600_v0, %v601_v35 }
 0x145   : > { %v4083_v2 = vadd.f32 %v2637_v7, %v1426_v49  ;;  %1983 = vmatprep.mubr.bf16.mxu1 %v596_v9  ;;  %2990 = vmatprep.mubr.bf16.mxu0 %v3941_v14  ;;  %v1434_v14 = vadd.f32 %v4023_v51, %v3981_v31 }
 0x146   : > { %v2551_v19 = vpop.f32.mrf.mxu0  ;;  %v2639_v12 = vpop.f32.mrf.mxu1 }
 0x147   : > { %v4089_v34 = vadd.f32 %v2551_v19, %v2550_v38  ;;  %v2640_v16 = vadd.f32 %v2639_v12, %v2638_v47  ;;  %v1447_v47 = vadd.f32 %v4055_v32, %v3981_v31 }
 0x148   : > { %v2553_v40 = vpop.f32.mrf.mxu0  ;;  %v2641_v53 = vpop.f32.mrf.mxu1 }
 0x149   : > { %v4091_v22 = vadd.f32 %v2640_v16, %v1431_v41 }
 0x14a   : > { %v2554_v23 = vpop.f32.mrf.mxu0  ;;  %v2642_v61 = vpop.f32.mrf.mxu1 }
 0x14b   : > { %v4096_v8 = vadd.f32 %v2554_v23, %v2553_v40  ;;  %v2643_v60 = vadd.f32 %v2642_v61, %v2641_v53  ;;  %v1450_v53 = vadd.f32 %v4062_v44, %v3981_v31 }
 0x14c   : > { %v2556_v15 = vpop.f32.mrf.mxu0  ;;  %v2644_v45 = vpop.f32.mrf.mxu1  ;;  %1984 = vmatmul.mubr.bf16.gmra.mxu1 %v4039_v42  ;;  %2991 = vmatmul.mubr.bf16.gmra.mxu0 %v602_v21  ;;  %v1442_v42 = vadd.f32 %v4043_v59, %v3981_v31 }
 0x14d   : > { %v4099_v57 = vadd.f32 %v2643_v60, %v1434_v14 }
 0x14e   : > { %v2557_v55 = vpop.f32.mrf.mxu0  ;;  %v2645_v10 = vpop.f32.mrf.mxu1 }
 0x14f   : > { %v4103_v48 = vadd.f32 %v2557_v55, %v2556_v15  ;;  %v2646_v29 = vadd.f32 %v2645_v10, %v2644_v45 }
 0x150   : > { %v2559_v3 = vpop.f32.mrf.mxu0  ;;  %v2647_v51 = vpop.f32.mrf.mxu1 }
 0x151   : > { %v4105_v5 = vadd.f32 %v2646_v29, %v1439_v20 }
 0x152   : > { %v2560_v62 = vpop.f32.mrf.mxu0  ;;  %v2648_v52 = vpop.f32.mrf.mxu1 }
 0x153   : > { %v4109_v27 = vadd.f32 %v2560_v62, %v2559_v3  ;;  %v2649_v13 = vadd.f32 %v2648_v52, %v2647_v51 }
 0x154   : > { %v2650_v9 = vpop.f32.mrf.mxu1  ;;  %v2714_v49 = vpop.f32.mrf.mxu0 }
 0x155   : > { %v4111_v7 = vadd.f32 %v2649_v13, %v1442_v42 }
 0x156   : > { %v2651_v30 = vpop.f32.mrf.mxu1  ;;  %v2715_v38 = vpop.f32.mrf.mxu0 }
 0x157   : > { %v2652_v0 = vadd.f32 %v2651_v30, %v2650_v9  ;;  %v2716_v35 = vadd.f32 %v2715_v38, %v2714_v49 }
 0x158   : > { %v2653_v19 = vpop.f32.mrf.mxu1  ;;  %v2717_v12 = vpop.f32.mrf.mxu0 }
 0x159   : > { %v4115_v41 = vadd.f32 %v2652_v0, %v1447_v47  ;;  %v4118_v59 = vadd.f32 %v2716_v35, %v3987_v4  ;;  %v1455_v4 = vadd.f32 %v4072_v56, %v3981_v31 }
 0x15a   : > { %v2654_v16 = vpop.f32.mrf.mxu1  ;;  %v2718_v40 = vpop.f32.mrf.mxu0 }
 0x15b   : > { %v2655_v21 = vadd.f32 %v2654_v16, %v2653_v19  ;;  %v2719_v23 = vadd.f32 %v2718_v40, %v2717_v12 }
 0x15c   : > { %v2656_v61 = vpop.f32.mrf.mxu1  ;;  %v2720_v14 = vpop.f32.mrf.mxu0 }
 0x15d   : > { %v4122_v60 = vadd.f32 %v2655_v21, %v1450_v53  ;;  %v4125_v32 = vadd.f32 %v2719_v23, %v3995_v11  ;;  %v1458_v11 = vadd.f32 %v4079_v37, %v3981_v31 }
 0x15e   : > { %v2657_v15 = vpop.f32.mrf.mxu1  ;;  %v2721_v45 = vpop.f32.mrf.mxu0 }
 0x15f   : > { %v2658_v55 = vadd.f32 %v2657_v15, %v2656_v61  ;;  %v2722_v10 = vadd.f32 %v2721_v45, %v2720_v14 }
 0x160   : > { %v2659_v20 = vpop.f32.mrf.mxu1  ;;  %v2723_v29 = vpop.f32.mrf.mxu0 }
 0x161   : > { %v4129_v3 = vadd.f32 %v2658_v55, %v1455_v4  ;;  %v4132_v44 = vadd.f32 %v2722_v10, %v4003_v33  ;;  %v1463_v33 = vadd.f32 %v4089_v34, %v3981_v31 }
 0x162   : > { %v2660_v51 = vpop.f32.mrf.mxu1  ;;  %v2724_v62 = vpop.f32.mrf.mxu0 }
 0x163   : > { %v2661_v52 = vadd.f32 %v2660_v51, %v2659_v20  ;;  %v2725_v42 = vadd.f32 %v2724_v62, %v2723_v29 }
 0x164   : > { %v2662_v13 = vpop.f32.mrf.mxu1  ;;  %v2726_v9 = vpop.f32.mrf.mxu0 }
 0x165   : > { %v4136_v49 = vadd.f32 %v2661_v52, %v1458_v11  ;;  %v4139_v56 = vadd.f32 %v2725_v42, %v4011_v18  ;;  %v1466_v18 = vadd.f32 %v4096_v8, %v3981_v31 }
 0x166   : > { %v2663_v30 = vpop.f32.mrf.mxu1  ;;  %v2727_v38 = vpop.f32.mrf.mxu0 }
 0x167   : > { %v2664_v47 = vadd.f32 %v2663_v30, %v2662_v13  ;;  %v2728_v0 = vadd.f32 %v2727_v38, %v2726_v9 }
 0x168   : > { %v2665_v35 = vpop.f32.mrf.mxu1  ;;  %v2729_v19 = vpop.f32.mrf.mxu0 }
 0x169   : > { %v4143_v12 = vadd.f32 %v2664_v47, %v1463_v33  ;;  %v4146_v37 = vadd.f32 %v2728_v0, %v4019_v58  ;;  %v1471_v58 = vadd.f32 %v4103_v48, %v3981_v31 }
 0x16a   : > { %v2666_v16 = vpop.f32.mrf.mxu1  ;;  %v2730_v40 = vpop.f32.mrf.mxu0 }
 0x16b   : > { %v2667_v53 = vadd.f32 %v2666_v16, %v2665_v35  ;;  %v2731_v21 = vadd.f32 %v2730_v40, %v2729_v19 }
 0x16c   : > { %v2668_v23 = vpop.f32.mrf.mxu1  ;;  %v2732_v61 = vpop.f32.mrf.mxu0 }
 0x16d   : > { %v4150_v14 = vadd.f32 %v2667_v53, %v1466_v18  ;;  %v4153_v34 = vadd.f32 %v2731_v21, %v4027_v63  ;;  %v1474_v63 = vadd.f32 %v4109_v27, %v3981_v31 }
 0x16e   : > { %v2669_v15 = vpop.f32.mrf.mxu1  ;;  %v2733_v45 = vpop.f32.mrf.mxu0 }
 0x16f   : > { %v2670_v4 = vadd.f32 %v2669_v15, %v2668_v23  ;;  %v2734_v55 = vadd.f32 %v2733_v45, %v2732_v61 }
 0x170   : > { %v2671_v10 = vpop.f32.mrf.mxu1  ;;  %v2735_v20 = vpop.f32.mrf.mxu0 }
 0x171   : > { %v4157_v29 = vadd.f32 %v2670_v4, %v1471_v58  ;;  %v4160_v8 = vadd.f32 %v2734_v55, %v4037_v50  ;;  %v1479_v50 = vadd.f32 %v3922_v24, %v3981_v31 }
 0x172   : > { %v2672_v51 = vpop.f32.mrf.mxu1  ;;  %v2736_v62 = vpop.f32.mrf.mxu0 }
 0x173   : > { %v2673_v11 = vadd.f32 %v2672_v51, %v2671_v10  ;;  %v2737_v52 = vadd.f32 %v2736_v62, %v2735_v20 }
 0x174   : > { %v2674_v42 = vpop.f32.mrf.mxu1  ;;  %v2738_v13 = vpop.f32.mrf.mxu0 }
 0x175   : > { %v4164_v9 = vadd.f32 %v2673_v11, %v1474_v63  ;;  %v4167_v48 = vadd.f32 %v2737_v52, %v4048_v6  ;;  %v1482_v6 = vadd.f32 %v3927_v46, %v3981_v31 }
 0x176   : > { %v2675_v30 = vpop.f32.mrf.mxu1  ;;  %v2739_v38 = vpop.f32.mrf.mxu0 }
 0x177   : > { %v2676_v33 = vadd.f32 %v2675_v30, %v2674_v42  ;;  %v2740_v47 = vadd.f32 %v2739_v38, %v2738_v13 }
 0x178   : > { %v2677_v0 = vpop.f32.mrf.mxu1  ;;  %v2741_v35 = vpop.f32.mrf.mxu0 }
 0x179   : > { %v4171_v19 = vadd.f32 %v2676_v33, %v1479_v50  ;;  %v4174_v27 = vadd.f32 %v2740_v47, %v4057_v17  ;;  %v1487_v17 = vadd.f32 %v3937_v1, %v3981_v31 }
 0x17a   : > { %v2678_v16 = vpop.f32.mrf.mxu1  ;;  %v2742_v40 = vpop.f32.mrf.mxu0 }
 0x17b   : > { %v2679_v18 = vadd.f32 %v2678_v16, %v2677_v0  ;;  %v2743_v53 = vadd.f32 %v2742_v40, %v2741_v35 }
 0x17c   : > { %v2680_v21 = vpop.f32.mrf.mxu1  ;;  %v2744_v23 = vpop.f32.mrf.mxu0 }
 0x17d   : > { %v4178_v61 = vadd.f32 %v2679_v18, %v1482_v6  ;;  %v4181_v24 = vadd.f32 %v2743_v53, %v4066_v43  ;;  %v1490_v43 = vadd.f32 %v3945_v54, %v3981_v31 }
 0x17e   : > { %v2681_v15 = vpop.f32.mrf.mxu1  ;;  %v2745_v45 = vpop.f32.mrf.mxu0 }
 0x17f   : > { %4723 = vst [vmem:[#allocation5_spill] sm:$0xff] %v4181_v24  ;;  %v2682_v58 = vadd.f32 %v2681_v15, %v2680_v21  ;;  %v2746_v4 = vadd.f32 %v2745_v45, %v2744_v23  ;;  %v3136_v24 = vld [vmem:[%s3337_s28 + $0x90] sm:$0xff] }
 0x180   : > { %v2683_v55 = vpop.f32.mrf.mxu1  ;;  %v2747_v10 = vpop.f32.mrf.mxu0 }
 0x181   : > { %v4185_v20 = vadd.f32 %v2682_v58, %v1487_v17  ;;  %v4188_v46 = vadd.f32 %v2746_v4, %v4074_v28  ;;  %v1495_v28 = vadd.f32 %v3953_v25, %v3981_v31 }
 0x182   : > { %v2684_v51 = vpop.f32.mrf.mxu1  ;;  %v2748_v62 = vpop.f32.mrf.mxu0 }
 0x183   : > { %v2685_v63 = vadd.f32 %v2684_v51, %v2683_v55  ;;  %v2749_v11 = vadd.f32 %v2748_v62, %v2747_v10 }
 0x184   : > { %v2686_v52 = vpop.f32.mrf.mxu1  ;;  %v2750_v42 = vpop.f32.mrf.mxu0 }
 0x185   : > { %v4192_v13 = vadd.f32 %v2685_v63, %v1490_v43  ;;  %v4195_v1 = vadd.f32 %v2749_v11, %v4083_v2  ;;  %v1498_v2 = vadd.f32 %v3960_v36, %v3981_v31 }
 0x186   : > { %v2687_v30 = vpop.f32.mrf.mxu1  ;;  %v2751_v38 = vpop.f32.mrf.mxu0 }
 0x187   : > { %4724 = vst [vmem:[#allocation6_spill] sm:$0xff] %v4195_v1  ;;  %v2688_v50 = vadd.f32 %v2687_v30, %v2686_v52  ;;  %v2752_v33 = vadd.f32 %v2751_v38, %v2750_v42  ;;  %v3144_v1 = vld [vmem:[%s3337_s28 + $0xa8] sm:$0xff] }
 0x188   : > { %v2689_v47 = vpop.f32.mrf.mxu1  ;;  %v2753_v0 = vpop.f32.mrf.mxu0 }
 0x189   : > { %v4199_v35 = vadd.f32 %v2688_v50, %v1495_v28  ;;  %v4202_v54 = vadd.f32 %v2752_v33, %v4091_v22  ;;  %v1503_v22 = vadd.f32 %v3968_v39, %v3981_v31 }
 0x18a   : > { %v2690_v16 = vpop.f32.mrf.mxu1  ;;  %v2754_v40 = vpop.f32.mrf.mxu0 }
 0x18b   : > { %4725 = vst [vmem:[#allocation7_spill] sm:$0xff] %v4202_v54  ;;  %v2691_v6 = vadd.f32 %v2690_v16, %v2689_v47  ;;  %v2755_v18 = vadd.f32 %v2754_v40, %v2753_v0 }
 0x18c   : > { %v2692_v53 = vpop.f32.mrf.mxu1  ;;  %v2756_v21 = vpop.f32.mrf.mxu0 }
 0x18d   : > { %v4206_v23 = vadd.f32 %v2691_v6, %v1498_v2  ;;  %v4209_v25 = vadd.f32 %v2755_v18, %v4099_v57  ;;  %v1506_v57 = vadd.f32 %v3972_v26, %v3981_v31 }
 0x18e   : > { %v2693_v15 = vpop.f32.mrf.mxu1  ;;  %v2757_v45 = vpop.f32.mrf.mxu0 }
 0x18f   : > { %4726 = vst [vmem:[#allocation8_spill] sm:$0xff] %v4209_v25  ;;  %v2694_v17 = vadd.f32 %v2693_v15, %v2692_v53  ;;  %v2758_v58 = vadd.f32 %v2757_v45, %v2756_v21 }
 0x190   : > { %v2695_v4 = vpop.f32.mrf.mxu1  ;;  %v2759_v55 = vpop.f32.mrf.mxu0 }
 0x191   : > { %v4213_v10 = vadd.f32 %v2694_v17, %v1503_v22  ;;  %v4216_v36 = vadd.f32 %v2758_v58, %v4105_v5 }
 0x192   : > { %v2696_v51 = vpop.f32.mrf.mxu1  ;;  %v2760_v62 = vpop.f32.mrf.mxu0 }
 0x193   : > { %4727 = vst [vmem:[#allocation9_spill] sm:$0xff] %v4216_v36  ;;  %v2697_v43 = vadd.f32 %v2696_v51, %v2695_v4  ;;  %v2761_v63 = vadd.f32 %v2760_v62, %v2759_v55 }
 0x194   : > { %v2762_v11 = vpop.f32.mrf.mxu0  ;;  %v4220_v52 = vpop.f32.mrf.mxu1 }
 0x195   : > { %v4222_v39 = vadd.f32 %v2697_v43, %v1506_v57  ;;  %v4225_v42 = vadd.f32 %v2761_v63, %v4111_v7 }
 0x196   : > { %v2763_v30 = vpop.f32.mrf.mxu0  ;;  %v4227_v38 = vpop.f32.mrf.mxu1 }
 0x197   : > { %4728 = vst [vmem:[#allocation10_spill] sm:$0xff] %v4225_v42  ;;  %v2764_v5 = vadd.f32 %v2763_v30, %v2762_v11  ;;  %v3133_v42 = vld [vmem:[%s3337_s28 + $0x50] sm:$0xff] }
 0x198   : > { %v2765_v28 = vpop.f32.mrf.mxu0  ;;  %v4229_v50 = vpop.f32.mrf.mxu1 }
 0x199   : > { %v4232_v33 = vadd.f32 %v2764_v5, %v4115_v41 }
 0x19a   : > { %v2766_v26 = vpop.f32.mrf.mxu0  ;;  %v4234_v31 = vpop.f32.mrf.mxu1 }
 0x19b   : > { %4729 = vst [vmem:[#allocation11_spill] sm:$0xff] %v4232_v33  ;;  %v2767_v47 = vadd.f32 %v2766_v26, %v2765_v28 }
 0x19c   : > { %v2768_v0 = vpop.f32.mrf.mxu0  ;;  %v4236_v16 = vpop.f32.mrf.mxu1 }
 0x19d   : > { %v4239_v7 = vadd.f32 %v2767_v47, %v4122_v60 }
 0x19e   : > { %v2769_v40 = vpop.f32.mrf.mxu0  ;;  %v4241_v2 = vpop.f32.mrf.mxu1 }
 0x19f   : > { %4730 = vst [vmem:[#allocation12_spill] sm:$0xff] %v4239_v7  ;;  %v2770_v6 = vadd.f32 %v2769_v40, %v2768_v0 }
 0x1a0   : > { %v2771_v18 = vpop.f32.mrf.mxu0  ;;  %v4243_v53 = vpop.f32.mrf.mxu1 }
 0x1a1   : > { %v4246_v41 = vadd.f32 %v2770_v6, %v4129_v3 }
 0x1a2   : > { %v2772_v21 = vpop.f32.mrf.mxu0  ;;  %v4248_v15 = vpop.f32.mrf.mxu1 }
 0x1a3   : > { %4731 = vst [vmem:[#allocation13_spill] sm:$0xff] %v4246_v41  ;;  %v2773_v45 = vadd.f32 %v2772_v21, %v2771_v18 }
 0x1a4   : > { %v2774_v22 = vpop.f32.mrf.mxu0  ;;  %v4250_v17 = vpop.f32.mrf.mxu1 }
 0x1a5   : > { %v4253_v60 = vadd.f32 %v2773_v45, %v4136_v49 }
 0x1a6   : > { %v2775_v58 = vpop.f32.mrf.mxu0  ;;  %v4255_v4 = vpop.f32.mrf.mxu1 }
 0x1a7   : > { %4732 = vst [vmem:[#allocation14_spill] sm:$0xff] %v4253_v60  ;;  %v2776_v55 = vadd.f32 %v2775_v58, %v2774_v22 }
 0x1a8   : > { %v2777_v51 = vpop.f32.mrf.mxu0  ;;  %v4257_v62 = vpop.f32.mrf.mxu1 }
 0x1a9   : > { %v4260_v3 = vadd.f32 %v2776_v55, %v4143_v12 }
 0x1aa   : > { %v2778_v57 = vpop.f32.mrf.mxu0  ;;  %v4262_v43 = vpop.f32.mrf.mxu1 }
 0x1ab   : > { %4733 = vst [vmem:[#allocation15_spill] sm:$0xff] %v4260_v3  ;;  %v2779_v63 = vadd.f32 %v2778_v57, %v2777_v51 }
 0x1ac   : > { %v2780_v11 = vpop.f32.mrf.mxu0  ;;  %v4264_v30 = vpop.f32.mrf.mxu1 }
 0x1ad   : > { %v4267_v49 = vadd.f32 %v2779_v63, %v4150_v14 }
 0x1ae   : > { %v2781_v5 = vpop.f32.mrf.mxu0  ;;  %v4269_v28 = vpop.f32.mrf.mxu1 }
 0x1af   : > { %4734 = vst [vmem:[#allocation16_spill] sm:$0xff] %v4267_v49  ;;  %v2782_v26 = vadd.f32 %v2781_v5, %v2780_v11 }
 0x1b0   : > { %v2783_v47 = vpop.f32.mrf.mxu0  ;;  %v4271_v0 = vpop.f32.mrf.mxu1 }
 0x1b1   : > { %v4274_v12 = vadd.f32 %v2782_v26, %v4157_v29 }
 0x1b2   : > { %v2784_v40 = vpop.f32.mrf.mxu0  ;;  %v4276_v6 = vpop.f32.mrf.mxu1 }
 0x1b3   : > { %4735 = vst [vmem:[#allocation17_spill] sm:$0xff] %v4274_v12  ;;  %v2785_v18 = vadd.f32 %v2784_v40, %v2783_v47 }
 0x1b4   : > { %v2786_v21 = vpop.f32.mrf.mxu0  ;;  %v4278_v45 = vpop.f32.mrf.mxu1 }
 0x1b5   : > { %v4281_v14 = vadd.f32 %v2785_v18, %v4164_v9 }
 0x1b6   : > { %v2787_v22 = vpop.f32.mrf.mxu0  ;;  %v4283_v58 = vpop.f32.mrf.mxu1 }
 0x1b7   : > { %4736 = vst [vmem:[#allocation18_spill] sm:$0xff] %v4281_v14  ;;  %v2788_v55 = vadd.f32 %v2787_v22, %v2786_v21 }
 0x1b8   : > { %v2789_v51 = vpop.f32.mrf.mxu0  ;;  %v4285_v57 = vpop.f32.mrf.mxu1 }
 0x1b9   : > { %v4288_v29 = vadd.f32 %v2788_v55, %v4171_v19 }
 0x1ba   : > { %v2790_v63 = vpop.f32.mrf.mxu0  ;;  %v4290_v11 = vpop.f32.mrf.mxu1 }
 0x1bb   : > { %4737 = vst [vmem:[#allocation19_spill] sm:$0xff] %v4288_v29  ;;  %v2791_v5 = vadd.f32 %v2790_v63, %v2789_v51 }
 0x1bc   : > { %v2792_v26 = vpop.f32.mrf.mxu0  ;;  %v4292_v47 = vpop.f32.mrf.mxu1 }
 0x1bd   : > { %v4295_v9 = vadd.f32 %v2791_v5, %v4178_v61 }
 0x1be   : > { %v2793_v40 = vpop.f32.mrf.mxu0  ;;  %v4297_v18 = vpop.f32.mrf.mxu1 }
 0x1bf   : > { %4738 = vst [vmem:[#allocation20_spill] sm:$0xff] %v4295_v9  ;;  %v2794_v21 = vadd.f32 %v2793_v40, %v2792_v26 }
 0x1c0   : > { %v2795_v22 = vpop.f32.mrf.mxu0  ;;  %v4299_v49 = vpop.f32.mrf.mxu1 }
 0x1c1   : > { %v4302_v19 = vadd.f32 %v2794_v21, %v4185_v20 }
 0x1c2   : > { %v2796_v55 = vpop.f32.mrf.mxu0  ;;  %v4304_v51 = vpop.f32.mrf.mxu1 }
 0x1c3   : > { %4739 = vst [vmem:[#allocation21_spill] sm:$0xff] %v4302_v19  ;;  %v2797_v63 = vadd.f32 %v2796_v55, %v2795_v22  ;;  %v3124_v19 = vld [vmem:[%s3337_s28 + $0x30] sm:$0xff]  ;;  %v3125_v22 = vld [vmem:[%s3337_s28 + $0x38] sm:$0xff] }
 0x1c4   : > { %v2798_v61 = vpop.f32.mrf.mxu0  ;;  %v4306_v5 = vpop.f32.mrf.mxu1  ;;  %v802_v14 = vrot.slane %v3124_v19, 1  ;;  %v803_v55 = vrot.slane %v3125_v22, 1  ;;  %v3129_v19 = vld [vmem:[%s3337_s28 + $0x28] sm:$0x3]  ;;  %v3130_v22 = vld [vmem:[%s3337_s28 + $0x60] sm:$0xff] }
 0x1c5   : > { %4740 = vst [vmem:[#allocation22_spill] sm:$0xff] %v4306_v5  ;;  %v4309_v9 = vadd.f32 %v2797_v63, %v4192_v13  ;;  %v3126_v13 = vld [vmem:[%s3337_s28 + $0x18] sm:$0xff]  ;;  %v800_v33 = vrot.slane %v3129_v19, 1  ;;  %v812_v41 = vrot.slane %v3130_v22, 1 }
 0x1c6   : > { %v2799_v26 = vpop.f32.mrf.mxu0  ;;  %v4311_v40 = vpop.f32.mrf.mxu1  ;;  %v797_v63 = vrot.slane %v3126_v13, 1  ;;  %v3132_v13 = vld [vmem:[%s3337_s28 + $0x48] sm:$0xff]  ;;  %v3137_v22 = vld [vmem:[%s3337_s28 + $0x98] sm:$0xff] }
 0x1c7   : > { %4741 = vst [vmem:[#allocation23_spill] sm:$0xff] %v4309_v9  ;;  %4742 = vst [vmem:[#allocation24_spill] sm:$0xff] %v4311_v40  ;;  %v2800_v29 = vadd.f32 %v2799_v26, %v2798_v61  ;;  %v3127_v9 = vld [vmem:[%s3337_s28 + $0x20] sm:$0xff]  ;;  %v807_v25 = vrot.slane %v3132_v13, 1  ;;  %v822_v40 = vrot.slane %v3136_v24, 1  ;;  %v823_v5 = vrot.slane %v3137_v22, 1 }
 0x1c8   : > { %v2801_v20 = vpop.f32.mrf.mxu0  ;;  %v4313_v21 = vpop.f32.mrf.mxu1  ;;  %v798_v12 = vrot.slane %v3127_v9, 1  ;;  %v3128_v61 = vld [vmem:[%s3337_s28 + $0x40] sm:$0x3]  ;;  %v808_v9 = vrot.slane %v3133_v42, 1 }
 0x1c9   : > { %4743 = vst [vmem:[#allocation25_spill] sm:$0xff] %v4313_v21  ;;  %v4318_v3 = vadd.f32 %v2800_v29, %v4199_v35  ;;  %v805_v26 = vrot.slane %v3128_v61, 1  ;;  %v3131_v35 = vld [vmem:[%s3337_s28 + $0x68] sm:$0xff]  ;;  %v3134_v21 = vld [vmem:[%s3337_s28 + $0x70] sm:$0x3] }
 0x1ca   : > { %v2802_v7 = vpop.f32.mrf.mxu0  ;;  %v4323_v60 = vpop.f32.mrf.mxu1  ;;  %v813_v29 = vrot.slane %v3131_v35, 1  ;;  %v815_v54 = vrot.slane %v3134_v21, 1  ;;  %v4343_v42 = vsel %vm501_vm1, %v797_v63, %v798_v12  ;;  %v4351_v24 = vsel %vm501_vm1, %v798_v12, %v800_v33 }
 0x1cb   : > { %4744 = vst [vmem:[#allocation26_spill] sm:$0xff] %v4318_v3  ;;  %4745 = vst [vmem:[#allocation27_spill] sm:$0xff] %v4323_v60  ;;  %v2803_v3 = vadd.f32 %v2802_v7, %v2801_v20  ;;  %v3135_v60 = vld [vmem:[%s3337_s28 + $0x58] sm:$0x3]  ;;  %v4340_v7 = vsel %vm501_vm1, %v802_v14, %v803_v55  ;;  %v4346_v20 = vsel %vm501_vm1, %v803_v55, %v805_v26  ;;  %v3139_v14 = vld [vmem:[%s3337_s28 + $0x80] sm:$0xff] }
 0x1cc   : > { %v2804_v61 = vpop.f32.mrf.mxu0  ;;  %v4331_v36 = vpop.f32.mrf.mxu1  ;;  %v810_v19 = vrot.slane %v3135_v60, 1  ;;  %v3138_v60 = vld [vmem:[%s3337_s28 + $0x78] sm:$0xff]  ;;  %v818_v63 = vrot.slane %v3139_v14, 1  ;;  %v2834_v55 = vadd.f32 %v4241_v2, %v4236_v16  ;;  %v4361_v22 = vsel %vm501_vm1, %v807_v25, %v808_v9  ;;  %v3140_v16 = vld [vmem:[%s3337_s28 + $0xa0] sm:$0x3] }
 0x1cd   : > { %v4337_v35 = vadd.f32 %v2803_v3, %v4206_v23  ;;  %v4354_v23 = vsel %vm501_vm1, %v812_v41, %v813_v29  ;;  %v817_v3 = vrot.slane %v3138_v60, 1  ;;  %v4364_v33 = vsel %vm501_vm1, %v813_v29, %v815_v54 }
 0x1ce   : > { %v2805_v21 = vpop.f32.mrf.mxu0  ;;  %v4348_v13 = vpop.f32.mrf.mxu1  ;;  %v4369_v41 = vsel %vm501_vm1, %v808_v9, %v810_v19  ;;  %v4372_v60 = vsel %vm501_vm1, %v822_v40, %v823_v5  ;;  %v825_v2 = vrot.slane %v3140_v16, 1  ;;  %v2828_v54 = vadd.f32 %v4227_v38, %v4220_v52  ;;  %v3143_v9 = vld [vmem:[%s3337_s28 + $0xc8] sm:$0xff] }
 0x1cf   : > { %4746 = vst [vmem:[#allocation28_spill] sm:$0xff] %v4337_v35  ;;  %4747 = vst [vmem:[#allocation29_spill] sm:$0xff] %v4348_v13  ;;  %v2806_v26 = vadd.f32 %v2805_v21, %v2804_v61  ;;  %v3141_v61 = vld [vmem:[%s3337_s28 + $0x88] sm:$0x3]  ;;  %v3142_v21 = vld [vmem:[%s3337_s28 + $0xc0] sm:$0xff]  ;;  %v833_v19 = vrot.slane %v3143_v9, 1  ;;  %v4386_v16 = vsel %vm501_vm1, %v817_v3, %v818_v63  ;;  %v1874_v9 = vadd.f32 %v2834_v55, %v4132_v44 }
 0x1d0   : > { %v2807_v12 = vpop.f32.mrf.mxu0  ;;  %v4366_v35 = vpop.f32.mrf.mxu1  ;;  %4749 = vst [vmem:[#allocation31_spill] sm:$0xff] %v4369_v41  ;;  %4750 = vst [vmem:[#allocation32_spill] sm:$0xff] %v4372_v60  ;;  %v820_v25 = vrot.slane %v3141_v61, 1  ;;  %v832_v14 = vrot.slane %v3142_v21, 1  ;;  %v827_v61 = vrot.slane %v3144_v1, 1  ;;  %v3145_v60 = vld [vmem:[%s3337_s28 + $0xb0] sm:$0xff]  ;;  %v4399_v1 = vsel %vm501_vm1, %v823_v5, %v825_v2 }
 0x1d1   : > { %4748 = vst [vmem:[#allocation30_spill] sm:$0xff] %v4366_v35  ;;  %v4379_v29 = vadd.f32 %v2806_v26, %v4213_v10  ;;  %4753 = vst [vmem:[#allocation35_spill] sm:$0xff] %v4386_v16  ;;  %v828_v52 = vrot.slane %v3145_v60, 1  ;;  %v3146_v10 = vld [vmem:[%s3337_s28 + $0xd0] sm:$0x3]  ;;  %v2837_v26 = vadd.f32 %v4248_v15, %v4243_v53  ;;  %v3149_v13 = vld [vmem:[%s3337_s28 + $0xf8] sm:$0xff]  ;;  %v1866_v55 = vadd.f32 %v2828_v54, %v4118_v59 }
 0x1d2   : > { %v2808_v40 = vpop.f32.mrf.mxu0  ;;  %v4383_v35 = vpop.f32.mrf.mxu1  ;;  %v835_v38 = vrot.slane %v3146_v10, 1  ;;  %v4402_v60 = vsel %vm501_vm1, %v818_v63, %v820_v25  ;;  %v3148_v10 = vld [vmem:[%s3337_s28 + $0xf0] sm:$0xff]  ;;  %v843_v53 = vrot.slane %v3149_v13, 1  ;;  %v2831_v5 = vadd.f32 %v4234_v31, %v4229_v50 }
 0x1d3   : > { %4751 = vst [vmem:[#allocation33_spill] sm:$0xff] %v4379_v29  ;;  %4752 = vst [vmem:[#allocation34_spill] sm:$0xff] %v4383_v35  ;;  %v2809_v21 = vadd.f32 %v2808_v40, %v2807_v12  ;;  %v3147_v29 = vld [vmem:[%s3337_s28 + $0xb8] sm:$0x3]  ;;  %v842_v41 = vrot.slane %v3148_v10, 1  ;;  %v4411_v12 = vsel %vm501_vm1, %v832_v14, %v833_v19  ;;  %v2846_v63 = vadd.f32 %v4269_v28, %v4264_v30 }
 0x1d4   : > { %v830_v35 = vrot.slane %v3147_v29, 1  ;;  %v4396_v3 = vpop.f32.mrf.mxu1  ;;  %v2964_v16 = vpop.f32.mrf.mxu0  ;;  %v4424_v2 = vsel %vm501_vm1, %v827_v61, %v828_v52  ;;  %v4427_v59 = vsel %vm501_vm1, %v833_v19, %v835_v38  ;;  %v1877_v50 = vadd.f32 %v2837_v26, %v4139_v56  ;;  %v3150_v19 = vld [vmem:[%s3337_s28 + $0xd8] sm:$0xff]  ;;  %v3152_v26 = vld [vmem:[%s3337_s28 + $0x100] sm:$0x3] }
 0x1d5   : > { %v4407_v15 = vadd.f32 %v2809_v21, %v4222_v39  ;;  %v2035_v44 = vadd.f32 %v2964_v16, %v1874_v9  ;;  %v2840_v30 = vadd.f32 %v4255_v4, %v4250_v17  ;;  %v4439_v14 = vsel %vm501_vm1, %v842_v41, %v843_v53  ;;  %v3151_v16 = vld [vmem:[%s3337_s28 + $0xe0] sm:$0xff] }
 0x1d6   : > { %v4421_v13 = vpop.f32.mrf.mxu1  ;;  %v2026_v39 = vpop.f32.mrf.mxu0  ;;  %v4432_v31 = vsel %vm501_vm1, %v828_v52, %v830_v35  ;;  %v837_v40 = vrot.slane %v3150_v19, 1  ;;  %v2849_v17 = vadd.f32 %v4276_v6, %v4271_v0  ;;  %v1869_v52 = vadd.f32 %v2831_v5, %v4125_v32 }
 0x1d7   : > { %v2155_v25 = vadd.f32 %v2035_v44, %v4340_v7  ;;  %v2027_v54 = vadd.f32 %v2026_v39, %v1866_v55  ;;  %v838_v7 = vrot.slane %v3151_v16, 1  ;;  %v1890_v38 = vadd.f32 %v2846_v63, %v4160_v8  ;;  %v3153_v55 = vld [vmem:[%s3337_s28 + $0xe8] sm:$0x3] }
 0x1d8   : > { %v4436_v28 = vpop.f32.mrf.mxu1  ;;  %v2965_v29 = vpop.f32.mrf.mxu0  ;;  %v845_v21 = vrot.slane %v3152_v26, 1  ;;  %v840_v5 = vrot.slane %v3153_v55, 1  ;;  %v4755_v55 = vld [vmem:[#allocation31_spill] sm:$0xff] }
 0x1d9   : > { %vm2187_vm2 = vcmp.ge.f32.partialorder %v2155_v25, 0.0  ;;  %v2219_v56 = vmul.f32 0.2, %v2155_v25  ;;  %v2153_v35 = vadd.f32 %v2027_v54, %v4343_v42  ;;  %v2038_v61 = vadd.f32 %v2965_v29, %v1877_v50 }
 0x1da   : > { %v4446_v4 = vpop.f32.mrf.mxu1  ;;  %v2029_v41 = vpop.f32.mrf.mxu0  ;;  %v1882_v42 = vadd.f32 %v2840_v30, %v4146_v37  ;;  %v4460_v8 = vsel %vm501_vm1, %v837_v40, %v838_v7  ;;  %v2858_v54 = vadd.f32 %v4297_v18, %v4292_v47  ;;  %v4472_v29 = vsel %vm501_vm1, %v843_v53, %v845_v21  ;;  %v3154_v21 = vld [vmem:[%s3337_s28 + $0x120] sm:$0xff] }
 0x1db   : > { %v2251_v9 = vsel %vm2187_vm2, %v2155_v25, %v2219_v56  ;;  %vm2185_vm3 = vcmp.ge.f32.partialorder %v2153_v35, 0.0  ;;  %v2217_v10 = vmul.f32 0.2, %v2153_v35  ;;  %v2156_v44 = vadd.f32 %v2038_v61, %v4346_v20 }
 0x1dc   : > { %2283 = vst [vmem:[%s4453_s19 + $0x10] sm:$0xff] %v2251_v9  ;;  %v2030_v0 = vadd.f32 %v2029_v41, %v1869_v52  ;;  %v4456_v6 = vpop.f32.mrf.mxu1  ;;  %v2968_v32 = vpop.f32.mrf.mxu0  ;;  %v2843_v25 = vadd.f32 %v4262_v43, %v4257_v62  ;;  %v1893_v56 = vadd.f32 %v2849_v17, %v4167_v48  ;;  %v2852_v62 = vadd.f32 %v4283_v58, %v4278_v45  ;;  %v4499_v9 = vld [vmem:[%s3337_s28 + $0x128] sm:$0xff] }
 0x1dd   : > { %v2249_v63 = vsel %vm2185_vm3, %v2153_v35, %v2217_v10  ;;  %vm2188_vm4 = vcmp.ge.f32.partialorder %v2156_v44, 0.0  ;;  %v2220_v20 = vmul.f32 0.2, %v2156_v44  ;;  %v2051_v39 = vadd.f32 %v2968_v32, %v1890_v38  ;;  %v4754_v32 = vld [vmem:[#allocation29_spill] sm:$0xff] }
 0x1de   : > { %2281 = vst [vmem:[%s4453_s19] sm:$0xff] %v2249_v63  ;;  %v2154_v50 = vadd.f32 %v2030_v0, %v4351_v24  ;;  %v4469_v37 = vpop.f32.mrf.mxu1  ;;  %v2042_v30 = vpop.f32.mrf.mxu0  ;;  %v4482_v24 = vsel %vm501_vm1, %v838_v7, %v840_v5  ;;  %v2861_v48 = vadd.f32 %v4304_v51, %v4299_v49  ;;  %v1885_v61 = vadd.f32 %v2843_v25, %v4153_v34 }
 0x1df   : > { %v2252_v19 = vsel %vm2188_vm4, %v2156_v44, %v2220_v20  ;;  %v2159_v40 = vadd.f32 %v2051_v39, %v4354_v23  ;;  %v2043_v16 = vadd.f32 %v2042_v30, %v1882_v42  ;;  %v1906_v7 = vadd.f32 %v2858_v54, %v4188_v46  ;;  %v3156_v20 = vld [vmem:[%s3337_s28 + $0x108] sm:$0xff]  ;;  %v4756_v54 = vld [vmem:[#allocation32_spill] sm:$0xff] }
 0x1e0   : > { %2284 = vst [vmem:[%s4453_s19 + $0x18] sm:$0xff] %v2252_v19  ;;  %vm2186_vm5 = vcmp.ge.f32.partialorder %v2154_v50, 0.0  ;;  %v2218_v43 = vmul.f32 0.2, %v2154_v50  ;;  %v4479_v47 = vpop.f32.mrf.mxu1  ;;  %v2969_v18 = vpop.f32.mrf.mxu0  ;;  %v1898_v26 = vadd.f32 %v2852_v62, %v4174_v27  ;;  %v852_v34 = vrot.slane %v3154_v21, 1  ;;  %v4757_v19 = vld [vmem:[#allocation6_spill] sm:$0xff] }
 0x1e1   : > { %vm2191_vm6 = vcmp.ge.f32.partialorder %v2159_v40, 0.0  ;;  %v2223_v53 = vmul.f32 0.2, %v2159_v40  ;;  %v2157_v23 = vadd.f32 %v2043_v16, %v4361_v22  ;;  %v2054_v35 = vadd.f32 %v2969_v18, %v1893_v56  ;;  %v4758_v16 = vld [vmem:[#allocation22_spill] sm:$0xff] }
 0x1e2   : > { %v2250_v45 = vsel %vm2186_vm5, %v2154_v50, %v2218_v43  ;;  %v4487_v58 = vpop.f32.mrf.mxu1  ;;  %v2045_v17 = vpop.f32.mrf.mxu0  ;;  %v853_v46 = vrot.slane %v4499_v9, 1  ;;  %v2855_v0 = vadd.f32 %v4290_v11, %v4285_v57  ;;  %v2870_v42 = vadd.f32 %v4754_v32, %v4331_v36  ;;  %v4759_v57 = vld [vmem:[#allocation24_spill] sm:$0xff]  ;;  %v4519_v43 = vld [vmem:[%s3337_s28 + $0x110] sm:$0xff] }
 0x1e3   : > { %2282 = vst [vmem:[%s4453_s19 + $0x8] sm:$0xff] %v2250_v45  ;;  %v2255_v52 = vsel %vm2191_vm6, %v2159_v40, %v2223_v53  ;;  %vm2189_vm7 = vcmp.ge.f32.partialorder %v2157_v23, 0.0  ;;  %v2221_v41 = vmul.f32 0.2, %v2157_v23  ;;  %v2160_v22 = vadd.f32 %v2054_v35, %v4364_v33  ;;  %v4761_v45 = vld [vmem:[#allocation30_spill] sm:$0xff] }
 0x1e4   : > { %2287 = vst [vmem:[%s4453_s19 + $0x30] sm:$0xff] %v2255_v52  ;;  %v2046_v38 = vadd.f32 %v2045_v17, %v1885_v61  ;;  %v4494_v49 = vpop.f32.mrf.mxu1  ;;  %v2972_v51 = vpop.f32.mrf.mxu0  ;;  %v847_v39 = vrot.slane %v3156_v20, 1  ;;  %v1909_v40 = vadd.f32 %v2861_v48, %v4757_v19  ;;  %v2864_v11 = vadd.f32 %v4759_v57, %v4758_v16  ;;  %v4762_v61 = vld [vmem:[#allocation34_spill] sm:$0xff]  ;;  %v3158_v57 = vld [vmem:[%s3337_s28 + $0x130] sm:$0x3] }
 0x1e5   : > { %v2253_v10 = vsel %vm2189_vm7, %v2157_v23, %v2221_v41  ;;  %vm2192_vm8 = vcmp.ge.f32.partialorder %v2160_v22, 0.0  ;;  %v2224_v44 = vmul.f32 0.2, %v2160_v22  ;;  %v2067_v33 = vadd.f32 %v2972_v51, %v1906_v7  ;;  %v4760_v23 = vld [vmem:[#allocation35_spill] sm:$0xff]  ;;  %v4763_v41 = vld [vmem:[#allocation5_spill] sm:$0xff] }
 0x1e6   : > { %2285 = vst [vmem:[%s4453_s19 + $0x20] sm:$0xff] %v2253_v10  ;;  %v2158_v27 = vadd.f32 %v2046_v38, %v4755_v55  ;;  %v4508_v5 = vpop.f32.mrf.mxu1  ;;  %v2058_v63 = vpop.f32.mrf.mxu0  ;;  %v848_v18 = vrot.slane %v4519_v43, 1  ;;  %v2873_v17 = vadd.f32 %v4762_v61, %v4761_v45  ;;  %v4764_v51 = vld [vmem:[#allocation9_spill] sm:$0xff]  ;;  %v2882_v19 = vadd.f32 %v4469_v37, %v4456_v6 }
 0x1e7   : > { %v2256_v25 = vsel %vm2192_vm8, %v2160_v22, %v2224_v44  ;;  %v2163_v50 = vadd.f32 %v2067_v33, %v4756_v54  ;;  %v2059_v30 = vadd.f32 %v2058_v63, %v1898_v26  ;;  %v1901_v22 = vadd.f32 %v2855_v0, %v4763_v41  ;;  %v4766_v54 = vld [vmem:[#allocation25_spill] sm:$0xff] }
 0x1e8   : > { %2288 = vst [vmem:[%s4453_s19 + $0x38] sm:$0xff] %v2256_v25  ;;  %vm2190_vm9 = vcmp.ge.f32.partialorder %v2158_v27, 0.0  ;;  %v2222_v36 = vmul.f32 0.2, %v2158_v27  ;;  %v4516_v56 = vpop.f32.mrf.mxu1  ;;  %v2973_v62 = vpop.f32.mrf.mxu0  ;;  %v1922_v26 = vadd.f32 %v2870_v42, %v4764_v51  ;;  %v4536_v0 = vsel %vm501_vm1, %v852_v34, %v853_v46  ;;  %v4770_v51 = vld [vmem:[#allocation13_spill] sm:$0xff] }
 0x1e9   : > { %vm2195_vm10 = vcmp.ge.f32.partialorder %v2163_v50, 0.0  ;;  %v2227_v53 = vmul.f32 0.2, %v2163_v50  ;;  %v2161_v35 = vadd.f32 %v2059_v30, %v4760_v23  ;;  %v2070_v48 = vadd.f32 %v2973_v62, %v1909_v40 }
 0x1ea   : > { %v2254_v7 = vsel %vm2190_vm9, %v2158_v27, %v2222_v36  ;;  %v4525_v52 = vpop.f32.mrf.mxu1  ;;  %v2061_v38 = vpop.f32.mrf.mxu0  ;;  %v4765_v27 = vld [vmem:[#allocation7_spill] sm:$0xff]  ;;  %v4541_v42 = vsel %vm501_vm1, %v847_v39, %v848_v18  ;;  %v855_v39 = vrot.slane %v3158_v57, 1 }
 0x1eb   : > { %2286 = vst [vmem:[%s4453_s19 + $0x28] sm:$0xff] %v2254_v7  ;;  %v2259_v21 = vsel %vm2195_vm10, %v2163_v50, %v2227_v53  ;;  %vm2193_vm11 = vcmp.ge.f32.partialorder %v2161_v35, 0.0  ;;  %v2225_v10 = vmul.f32 0.2, %v2161_v35  ;;  %v2164_v44 = vadd.f32 %v2070_v48, %v4399_v1  ;;  %v4767_v50 = vld [vmem:[#allocation27_spill] sm:$0xff]  ;;  %v4768_v53 = vld [vmem:[#allocation10_spill] sm:$0xff] }
 0x1ec   : > { %2291 = vst [vmem:[%s4453_s19 + $0x50] sm:$0xff] %v2259_v21  ;;  %v2062_v33 = vadd.f32 %v2061_v38, %v1901_v22  ;;  %v2892_v32 = vpop.f32.mrf.mxu1  ;;  %v2976_v55 = vpop.f32.mrf.mxu0  ;;  %v1914_v63 = vadd.f32 %v2864_v11, %v4765_v27  ;;  %v2867_v30 = vadd.f32 %v4767_v50, %v4766_v54  ;;  %v1925_v23 = vadd.f32 %v2873_v17, %v4768_v53  ;;  %v4773_v53 = vld [vmem:[#allocation12_spill] sm:$0xff] }
 0x1ed   : > { %v2257_v20 = vsel %vm2193_vm11, %v2161_v35, %v2225_v10  ;;  %vm2196_vm12 = vcmp.ge.f32.partialorder %v2164_v44, 0.0  ;;  %v2228_v1 = vmul.f32 0.2, %v2164_v44  ;;  %v2083_v25 = vadd.f32 %v2976_v55, %v1922_v26 }
 0x1ee   : > { %2289 = vst [vmem:[%s4453_s19 + $0x40] sm:$0xff] %v2257_v20  ;;  %v2162_v34 = vadd.f32 %v2062_v33, %v4402_v60  ;;  %v2893_v40 = vpop.f32.mrf.mxu1  ;;  %v2074_v16 = vpop.f32.mrf.mxu0  ;;  %v2876_v35 = vadd.f32 %v4421_v13, %v4396_v3  ;;  %v3159_v60 = vld [vmem:[%s3337_s28 + $0x118] sm:$0x3]  ;;  %v2885_v17 = vadd.f32 %v4487_v58, %v4479_v47  ;;  %v1938_v26 = vadd.f32 %v2882_v19, %v4770_v51  ;;  %v4771_v58 = vld [vmem:[#allocation11_spill] sm:$0xff] }
 0x1ef   : > { %v2260_v11 = vsel %vm2196_vm12, %v2164_v44, %v2228_v1  ;;  %v2167_v36 = vadd.f32 %v2083_v25, %v4411_v12  ;;  %v2075_v62 = vadd.f32 %v2074_v16, %v1914_v63  ;;  %v850_v45 = vrot.slane %v3159_v60, 1  ;;  %v4769_v3 = vld [vmem:[#allocation8_spill] sm:$0xff]  ;;  %v4772_v16 = vld [vmem:[#allocation14_spill] sm:$0xff] }
 0x1f0   : > { %2292 = vst [vmem:[%s4453_s19 + $0x58] sm:$0xff] %v2260_v11  ;;  %vm2194_vm13 = vcmp.ge.f32.partialorder %v2162_v34, 0.0  ;;  %v2226_v6 = vmul.f32 0.2, %v2162_v34  ;;  %v2895_v37 = vpop.f32.mrf.mxu1  ;;  %v2977_v48 = vpop.f32.mrf.mxu0  ;;  %v1917_v13 = vadd.f32 %v2867_v30, %v4769_v3  ;;  %v1930_v55 = vadd.f32 %v2876_v35, %v4771_v58  ;;  %v3160_v30 = vld [vmem:[%s3337_s28 + $0x150] sm:$0xff]  ;;  %v4604_v3 = vld [vmem:[%s3337_s28 + $0x140] sm:$0xff] }
 0x1f1   : > { %vm2199_vm14 = vcmp.ge.f32.partialorder %v2167_v36, 0.0  ;;  %v2231_v61 = vmul.f32 0.2, %v2167_v36  ;;  %v2165_v7 = vadd.f32 %v2075_v62, %v4424_v2  ;;  %v2086_v12 = vadd.f32 %v2977_v48, %v1925_v23 }
 0x1f2   : > { %v2258_v41 = vsel %vm2194_vm13, %v2162_v34, %v2226_v6  ;;  %v2896_v22 = vpop.f32.mrf.mxu1  ;;  %v2077_v38 = vpop.f32.mrf.mxu0  ;;  %v4570_v27 = vsel %vm501_vm1, %v853_v46, %v855_v39  ;;  %v4575_v63 = vsel %vm501_vm1, %v848_v18, %v850_v45  ;;  %v2879_v25 = vadd.f32 %v4446_v4, %v4436_v28  ;;  %v4774_v6 = vld [vmem:[#allocation17_spill] sm:$0xff] }
 0x1f3   : > { %2290 = vst [vmem:[%s4453_s19 + $0x48] sm:$0xff] %v2258_v41  ;;  %v2263_v21 = vsel %vm2199_vm14, %v2167_v36, %v2231_v61  ;;  %vm2197_vm15 = vcmp.ge.f32.partialorder %v2165_v7, 0.0  ;;  %v2229_v10 = vmul.f32 0.2, %v2165_v7  ;;  %v2168_v44 = vadd.f32 %v2086_v12, %v4427_v59  ;;  %v4775_v12 = vld [vmem:[#allocation15_spill] sm:$0xff]  ;;  %v3162_v41 = vld [vmem:[%s3337_s28 + $0x138] sm:$0xff] }
 0x1f4   : > { %2295 = vst [vmem:[%s4453_s19 + $0x70] sm:$0xff] %v2263_v21  ;;  %v2078_v2 = vadd.f32 %v2077_v38, %v1917_v13  ;;  %v4564_v33 = vpop.f32.mrf.mxu1  ;;  %v2980_v47 = vpop.f32.mrf.mxu0  ;;  %v2894_v54 = vadd.f32 %v2893_v40, %v2892_v32  ;;  %v862_v43 = vrot.slane %v3160_v30, 1  ;;  %v1941_v57 = vadd.f32 %v2885_v17, %v4772_v16  ;;  %v4590_v32 = vld [vmem:[%s3337_s28 + $0x158] sm:$0xff] }
 0x1f5   : > { %v2261_v20 = vsel %vm2197_vm15, %v2165_v7, %v2229_v10  ;;  %vm2200_vm0 = vcmp.ge.f32.partialorder %v2168_v44, 0.0  ;;  %v2232_v59 = vmul.f32 0.2, %v2168_v44  ;;  %v2099_v1 = vadd.f32 %v2980_v47, %v1938_v26 }
 0x1f6   : > { %2293 = vst [vmem:[%s4453_s19 + $0x60] sm:$0xff] %v2261_v20  ;;  %v2166_v9 = vadd.f32 %v2078_v2, %v4432_v31  ;;  %v2899_v46 = vpop.f32.mrf.mxu1  ;;  %v2090_v50 = vpop.f32.mrf.mxu0  ;;  %v2888_v39 = vadd.f32 %v4508_v5, %v4494_v49  ;;  %v863_v40 = vrot.slane %v4590_v32, 1  ;;  %v2897_v62 = vadd.f32 %v2896_v22, %v2895_v37  ;;  %v4776_v2 = vld [vmem:[#allocation18_spill] sm:$0xff] }
 0x1f7   : > { %v2264_v19 = vsel %vm2200_vm0, %v2168_v44, %v2232_v59  ;;  %v2171_v18 = vadd.f32 %v2099_v1, %v4439_v14  ;;  %v2091_v34 = vadd.f32 %v2090_v50, %v1930_v55  ;;  %v1933_v23 = vadd.f32 %v2879_v25, %v4773_v53 }
 0x1f8   : > { %2296 = vst [vmem:[%s4453_s19 + $0x78] sm:$0xff] %v2264_v19  ;;  %vm2198_vm2 = vcmp.ge.f32.partialorder %v2166_v9, 0.0  ;;  %v2230_v28 = vmul.f32 0.2, %v2166_v9  ;;  %v4587_v4 = vpop.f32.mrf.mxu1  ;;  %v2981_v31 = vpop.f32.mrf.mxu0  ;;  %v1954_v48 = vadd.f32 %v2894_v54, %v4774_v6  ;;  %v1946_v17 = vadd.f32 %v2888_v39, %v4775_v12  ;;  %v3164_v54 = vld [vmem:[%s3337_s28 + $0x160] sm:$0x3] }
 0x1f9   : > { %vm2203_vm3 = vcmp.ge.f32.partialorder %v2171_v18, 0.0  ;;  %v2235_v14 = vmul.f32 0.2, %v2171_v18  ;;  %v2169_v11 = vadd.f32 %v2091_v34, %v4460_v8  ;;  %v2102_v36 = vadd.f32 %v2981_v31, %v1941_v57 }
 0x1fa   : > { %v2262_v49 = vsel %vm2198_vm2, %v2166_v9, %v2230_v28  ;;  %v4594_v5 = vpop.f32.mrf.mxu1  ;;  %v2093_v35 = vpop.f32.mrf.mxu0  ;;  %v857_v22 = vrot.slane %v3162_v41, 1  ;;  %v858_v13 = vrot.slane %v4604_v3, 1  ;;  %v1957_v47 = vadd.f32 %v2897_v62, %v4776_v2  ;;  %v4779_v62 = vld [vmem:[#allocation19_spill] sm:$0xff] }
 0x1fb   : > { %2294 = vst [vmem:[%s4453_s19 + $0x68] sm:$0xff] %v2262_v49  ;;  %v2267_v60 = vsel %vm2203_vm3, %v2171_v18, %v2235_v14  ;;  %vm2201_vm4 = vcmp.ge.f32.partialorder %v2169_v11, 0.0  ;;  %v2233_v45 = vmul.f32 0.2, %v2169_v11  ;;  %v2172_v61 = vadd.f32 %v2102_v36, %v4472_v29  ;;  %v4777_v18 = vld [vmem:[#allocation16_spill] sm:$0xff] }
 0x1fc   : > { %2299 = vst [vmem:[%s4453_s19 + $0x90] sm:$0xff] %v2267_v60  ;;  %v2094_v8 = vadd.f32 %v2093_v35, %v1933_v23  ;;  %v2904_v37 = vpop.f32.mrf.mxu1  ;;  %v2984_v7 = vpop.f32.mrf.mxu0  ;;  %v2891_v29 = vadd.f32 %v4525_v52, %v4516_v56  ;;  %v864_v58 = vsel %vm501_vm1, %v862_v43, %v863_v40  ;;  %v2900_v25 = vadd.f32 %v2899_v46, %v4564_v33  ;;  %v4778_v33 = vld [vmem:[#allocation21_spill] sm:$0xff] }
 0x1fd   : > { %v2265_v38 = vsel %vm2201_vm4, %v2169_v11, %v2233_v45  ;;  %vm2204_vm5 = vcmp.ge.f32.partialorder %v2172_v61, 0.0  ;;  %v2236_v51 = vmul.f32 0.2, %v2172_v61  ;;  %v2115_v26 = vadd.f32 %v2984_v7, %v1954_v48 }
 0x1fe   : > { %2297 = vst [vmem:[%s4453_s19 + $0x80] sm:$0xff] %v2265_v38  ;;  %v2170_v21 = vadd.f32 %v2094_v8, %v4482_v24  ;;  %v2905_v10 = vpop.f32.mrf.mxu1  ;;  %v2106_v44 = vpop.f32.mrf.mxu0  ;;  %v865_v9 = vrot.slane %v3164_v54, 1  ;;  %v1949_v34 = vadd.f32 %v2891_v29, %v4777_v18  ;;  %v859_v57 = vsel %vm501_vm1, %v857_v22, %v858_v13 }
 0x1ff   : > { %v2268_v55 = vsel %vm2204_vm5, %v2172_v61, %v2236_v51  ;;  %v2175_v20 = vadd.f32 %v2115_v26, %v4536_v0  ;;  %v2906_v59 = vadd.f32 %v2905_v10, %v2904_v37  ;;  %v2107_v1 = vadd.f32 %v2106_v44, %v1946_v17  ;;  %v3165_v61 = vld [vmem:[%s3337_s28 + $0x148] sm:$0x3]  ;;  %v4780_v17 = vld [vmem:[#allocation23_spill] sm:$0xff] }
 0x200   : > { %2300 = vst [vmem:[%s4453_s19 + $0x98] sm:$0xff] %v2268_v55  ;;  %vm2202_vm6 = vcmp.ge.f32.partialorder %v2170_v21, 0.0  ;;  %v2234_v56 = vmul.f32 0.2, %v2170_v21  ;;  %v2907_v24 = vpop.f32.mrf.mxu1  ;;  %v2985_v52 = vpop.f32.mrf.mxu0  ;;  %v1962_v49 = vadd.f32 %v2900_v25, %v4779_v62  ;;  %v866_v53 = vsel %vm501_vm1, %v863_v40, %v865_v9  ;;  %v3166_v37 = vld [vmem:[%s3337_s28 + $0x168] sm:$0xff]  ;;  %v4783_v62 = vld [vmem:[#allocation33_spill] sm:$0xff] }
 0x201   : > { %vm2207_vm7 = vcmp.ge.f32.partialorder %v2175_v20, 0.0  ;;  %v2239_v50 = vmul.f32 0.2, %v2175_v20  ;;  %v2173_v30 = vadd.f32 %v2107_v1, %v4541_v42  ;;  %v2118_v43 = vadd.f32 %v2985_v52, %v1957_v47  ;;  %v4781_v47 = vld [vmem:[#allocation20_spill] sm:$0xff]  ;;  %v3168_v52 = vld [vmem:[%s3337_s28 + $0x180] sm:$0xff] }
 0x202   : > { %v2266_v19 = vsel %vm2202_vm6, %v2170_v21, %v2234_v56  ;;  %v2908_v0 = vpop.f32.mrf.mxu1  ;;  %v2109_v16 = vpop.f32.mrf.mxu0  ;;  %v1970_v46 = vadd.f32 %v2906_v59, %v4778_v33  ;;  %v860_v8 = vrot.slane %v3165_v61, 1  ;;  %v867_v32 = vrot.slane %v3166_v37, 1  ;;  %v3170_v33 = vld [vmem:[%s3337_s28 + $0x178] sm:$0x3] }
 0x203   : > { %2298 = vst [vmem:[%s4453_s19 + $0x88] sm:$0xff] %v2266_v19  ;;  %v2271_v39 = vsel %vm2207_vm7, %v2175_v20, %v2239_v50  ;;  %vm2205_vm8 = vcmp.ge.f32.partialorder %v2173_v30, 0.0  ;;  %v2237_v28 = vmul.f32 0.2, %v2173_v30  ;;  %v2176_v31 = vadd.f32 %v2118_v43, %v4570_v27  ;;  %v4782_v50 = vld [vmem:[#allocation26_spill] sm:$0xff] }
 0x204   : > { %2303 = vst [vmem:[%s4453_s19 + $0xb0] sm:$0xff] %v2271_v39  ;;  %v2909_v42 = vadd.f32 %v2908_v0, %v2907_v24  ;;  %v2110_v14 = vadd.f32 %v2109_v16, %v1949_v34  ;;  %v2910_v11 = vpop.f32.mrf.mxu1  ;;  %v2988_v36 = vpop.f32.mrf.mxu0  ;;  %v2903_v27 = vadd.f32 %v4594_v5, %v4587_v4  ;;  %v861_v2 = vsel %vm501_vm1, %v858_v13, %v860_v8  ;;  %v3169_v0 = vld [vmem:[%s3337_s28 + $0x188] sm:$0xff] }
 0x205   : > { %v2269_v23 = vsel %vm2205_vm8, %v2173_v30, %v2237_v28  ;;  %vm2208_vm9 = vcmp.ge.f32.partialorder %v2176_v31, 0.0  ;;  %v2240_v35 = vmul.f32 0.2, %v2176_v31  ;;  %v2131_v6 = vadd.f32 %v2988_v36, %v1970_v46 }
 0x206   : > { %2301 = vst [vmem:[%s4453_s19 + $0xa0] sm:$0xff] %v2269_v23  ;;  %v2174_v48 = vadd.f32 %v2110_v14, %v4575_v63  ;;  %v2911_v60 = vpop.f32.mrf.mxu1  ;;  %v2122_v45 = vpop.f32.mrf.mxu0  ;;  %v1973_v41 = vadd.f32 %v2909_v42, %v4780_v17  ;;  %v3167_v63 = vld [vmem:[%s3337_s28 + $0x170] sm:$0xff]  ;;  %v872_v54 = vrot.slane %v3168_v52, 1  ;;  %v873_v18 = vrot.slane %v3169_v0, 1 }
 0x207   : > { %v2272_v7 = vsel %vm2208_vm9, %v2176_v31, %v2240_v35  ;;  %v2179_v40 = vadd.f32 %v2131_v6, %v864_v58  ;;  %v2123_v12 = vadd.f32 %v2122_v45, %v1962_v49  ;;  %v2912_v4 = vadd.f32 %v2911_v60, %v2910_v11  ;;  %v3171_v11 = vld [vmem:[%s3337_s28 + $0x190] sm:$0x3]  ;;  %s2473_s28 = sshll.u32 %s3278_s16, 12  ;;  %s4677_s16 = scalar_lea.sflag [#allocation3], %s161_s11 }
 0x208   : > { %2304 = vst [vmem:[%s4453_s19 + $0xb8] sm:$0xff] %v2272_v7  ;;  %vm2206_vm10 = vcmp.ge.f32.partialorder %v2174_v48, 0.0  ;;  %v2238_v22 = vmul.f32 0.2, %v2174_v48  ;;  %v2913_v5 = vpop.f32.mrf.mxu1  ;;  %v2989_v38 = vpop.f32.mrf.mxu0  ;;  %v868_v51 = vrot.slane %v3167_v63, 1  ;;  %v1965_v58 = vadd.f32 %v2903_v27, %v4781_v47  ;;  %s4670_s26 = scalar_lea.hbm %s4720_s3, %s2473_s28 }
 0x209   : > { %vm2211_vm11 = vcmp.ge.f32.partialorder %v2179_v40, 0.0  ;;  %v2243_v26 = vmul.f32 0.2, %v2179_v40  ;;  %v2177_v29 = vadd.f32 %v2123_v12, %v859_v57  ;;  %v2134_v21 = vadd.f32 %v2989_v38, %v1973_v41 }
 0x20a   : > { %v2270_v10 = vsel %vm2206_vm10, %v2174_v48, %v2238_v22  ;;  %v2914_v44 = vpop.f32.mrf.mxu1  ;;  %v2125_v55 = vpop.f32.mrf.mxu0  ;;  %v869_v3 = vsel %vm501_vm1, %v867_v32, %v868_v51  ;;  %v1978_v30 = vadd.f32 %v2912_v4, %v4782_v50  ;;  %v870_v46 = vrot.slane %v3170_v33, 1  ;;  %v4784_v48 = vld [vmem:[#allocation28_spill] sm:$0xff] }
 0x20b   : > { %2302 = vst [vmem:[%s4453_s19 + $0xa8] sm:$0xff] %v2270_v10  ;;  %v2275_v20 = vsel %vm2211_vm11, %v2179_v40, %v2243_v26  ;;  %vm2209_vm12 = vcmp.ge.f32.partialorder %v2177_v29, 0.0  ;;  %v2241_v59 = vmul.f32 0.2, %v2177_v29  ;;  %v2180_v1 = vadd.f32 %v2134_v21, %v866_v53 }
 0x20c   : > { %2307 = vst [vmem:[%s4453_s19 + $0xd0] sm:$0xff] %v2275_v20  ;;  %v2126_v25 = vadd.f32 %v2125_v55, %v1965_v58  ;;  %v2916_v56 = vpop.f32.mrf.mxu1  ;;  %v2992_v24 = vpop.f32.mrf.mxu0  ;;  %v2915_v43 = vadd.f32 %v2914_v44, %v2913_v5  ;;  %v875_v36 = vrot.slane %v3171_v11, 1  ;;  %v874_v35 = vsel %vm501_vm1, %v872_v54, %v873_v18 }
 0x20d   : > { %v2273_v13 = vsel %vm2209_vm12, %v2177_v29, %v2241_v59  ;;  %vm2212_vm13 = vcmp.ge.f32.partialorder %v2180_v1, 0.0  ;;  %v2244_v9 = vmul.f32 0.2, %v2180_v1  ;;  %v871_v27 = vsel %vm501_vm1, %v868_v51, %v870_v46 }
 0x20e   : > { %2305 = vst [vmem:[%s4453_s19 + $0xc0] sm:$0xff] %v2273_v13  ;;  %v2178_v19 = vadd.f32 %v2126_v25, %v861_v2  ;;  %v2917_v34 = vpop.f32.mrf.mxu1  ;;  %v2138_v16 = vpop.f32.mrf.mxu0  ;;  %v1981_v60 = vadd.f32 %v2915_v43, %v4784_v48  ;;  %v876_v17 = vsel %vm501_vm1, %v873_v18, %v875_v36 }
 0x20f   : > { %v2276_v57 = vsel %vm2212_vm13, %v2180_v1, %v2244_v9  ;;  %v2918_v39 = vadd.f32 %v2917_v34, %v2916_v56  ;;  %v2139_v28 = vadd.f32 %v2138_v16, %v1978_v30 }
 0x210   : > { %2308 = vst [vmem:[%s4453_s19 + $0xd8] sm:$0xff] %v2276_v57  ;;  %vm2210_vm14 = vcmp.ge.f32.partialorder %v2178_v19, 0.0  ;;  %v2242_v31 = vmul.f32 0.2, %v2178_v19  ;;  %v2919_v42 = vpop.f32.mrf.mxu1  ;;  %v2993_v14 = vpop.f32.mrf.mxu0 }
 0x211   : > { %v1986_v49 = vadd.f32 %v2918_v39, %v4783_v62  ;;  %v2181_v53 = vadd.f32 %v2139_v28, %v869_v3 }
 0x212   : > { %v2274_v23 = vsel %vm2210_vm14, %v2178_v19, %v2242_v31  ;;  %v2920_v6 = vpop.f32.mrf.mxu1  ;;  %v2141_v45 = vpop.f32.mrf.mxu0 }
 0x213   : > { %2306 = vst [vmem:[%s4453_s19 + $0xc8] sm:$0xff] %v2274_v23  ;;  %v2147_v61 = vadd.f32 %v2992_v24, %v1986_v49  ;;  %vm2213_vm15 = vcmp.ge.f32.partialorder %v2181_v53, 0.0  ;;  %v2245_v8 = vmul.f32 0.2, %v2181_v53  ;;  %v2921_v37 = vadd.f32 %v2920_v6, %v2919_v42 }
 0x214   : > { %v2142_v32 = vadd.f32 %v2141_v45, %v1981_v60 }
 0x215   : > { %v2183_v7 = vadd.f32 %v2147_v61, %v874_v35  ;;  %v2277_v40 = vsel %vm2213_vm15, %v2181_v53, %v2245_v8  ;;  %v1989_v12 = vadd.f32 %v2921_v37, %v4407_v15 }
 0x216   : > { %2309 = vst [vmem:[%s4453_s19 + $0xe0] sm:$0xff] %v2277_v40  ;;  %v2182_v41 = vadd.f32 %v2142_v32, %v871_v27 }
 0x217   : > { %vm2215_vm0 = vcmp.ge.f32.partialorder %v2183_v7, 0.0  ;;  %v2247_v22 = vmul.f32 0.2, %v2183_v7  ;;  %v2150_v4 = vadd.f32 %v2993_v14, %v1989_v12 }
 0x218   : > { %vm2214_vm2 = vcmp.ge.f32.partialorder %v2182_v41, 0.0  ;;  %v2246_v5 = vmul.f32 0.2, %v2182_v41 }
 0x219   : > { %v2279_v38 = vsel %vm2215_vm0, %v2183_v7, %v2247_v22  ;;  %v2184_v63 = vadd.f32 %v2150_v4, %v876_v17 }
 0x21a   : > { %2311 = vst [vmem:[%s4453_s19 + $0xf0] sm:$0xff] %v2279_v38  ;;  %v2278_v51 = vsel %vm2214_vm2, %v2182_v41, %v2246_v5 }
 0x21b   : > { %vm2216_vm3 = vcmp.ge.f32.partialorder %v2184_v63, 0.0  ;;  %v2248_v15 = vmul.f32 0.2, %v2184_v63  ;;  %2310 = vst [vmem:[%s4453_s19 + $0xe8] sm:$0xff] %v2278_v51 }
 0x21d   : > { %v2280_v26 = vsel %vm2216_vm3, %v2184_v63, %v2248_v15 }
 0x21e   : > { %2312 = vst [vmem:[%s4453_s19 + $0xf8] sm:$0xff] %v2280_v26 }
 0x21f   : > { %3185 = shalt.err (!%p3182_p3)
}
 0x220   : > { %s3186_s5 = scalar_lea.hbm %s4670_s26, 4096  ;;  %s3190_s8 = scalar_lea.hbm %s4720_s3, 8192 }
 0x221   : > { %p3187_p4 = scmp.ne.s32.totalorder %s4670_s26, %s3186_s5  ;;  %p3191_p9 = scmp.lt.s32.totalorder %s4670_s26, %s4720_s3 }
 0x222   : > { %p3192_p10 = scmp.lt.s32.totalorder %s3190_s8, %s3186_s5 }
 0x223   : > { %p3188_p7 = pnand %p3187_p4, %p3295_p5 }
 0x224   : > { %p3193_p11 = por %p3192_p10, %p3191_p9 }
 0x225   : > { %p3189_p8 = pneg %p3188_p7 }
 0x227   : > { %p3194_p12 = pnand %p3193_p11, %p3189_p8 }
 0x229   : > { %3197 = shalt.err (!%p3194_p12)
}
 0x22a   : > { %s3235_s11 = smov 128   ;;  %s3236_s17 = smov 8  }
 0x22b   : > { %3011 = dma.vmem_to_hbm [thread:$0]  (%p3295_p5), %s4672_s20, 4096, %s4670_s26, %s4677_s16, %s3235_s11, %s3235_s11, %s3236_s17  }
 0x22c PF: > { %p3017_p13 = scmp.ge.s32.totalorder %s3232_s15, 2  ;;  %s2342_s19 = sand.u32 1, %s3220_s12  }
 0x22d   : > { %s2343_s28 = scalar_lea.sflag [#allocation3], %s2342_s19 }
 0x22e   : > { %p3014_p0 = pnand %p3017_p13, %p3299_p6 }
 0x230   : > { %p3015_p1 = pneg %p3014_p0 }
 0x232   : > { %3215 = dma.done.wait (%p3015_p1), %s2343_s28, 4096  }
 0x233   : > { %3217 = vsyncadd (%p3015_p1), %s2343_s28, 4294963200  ;;  %p13_p2 = scmp.ge.s32.totalorder %s3282_s18, 4   ;;  %s4785_s12 = smov %s3224_s13 }
 0x234   : > { %s4786_s13 = smov %s3228_s14  ;;  %s4787_s14 = smov %s3293_s21 }
 0x235   : > { %s4788_s15 = smov %s3282_s18  ;;  %15 = sbr.rel (!%p13_p2) target bundleno = 3 (0x3), region = 67 }
 0x23a   :  { %2348 = vsyncpa [#allocation3], 1 }
 0x23b   :  { %2350 = vsyncpa [#allocation3 + $0x1], 1 }

</bundles_post_ra>
